<compile_context>
chip_gen: v5e
topology: v5e:2x2
jax: 0.10.0
libtpu: 0.0.40
codegen_flags: <defaults>
</compile_context>

<pallas_src>
import jax
import jax.numpy as jnp
from jax.experimental import pallas as pl
from jax.experimental.pallas import tpu as pltpu

PAD = 0  # ModelConfig.t2vec.PAD


# ----------------------------- Pallas kernels ------------------------------

def _dense_kernel(x_ref, w_ref, b_ref, o_ref):
    o_ref[...] = (jnp.dot(x_ref[...], w_ref[...],
                          preferred_element_type=jnp.float32) + b_ref[...])


def dense(x, w, b):
    """(M, K) @ (K, N) + (1, N) in a single VMEM-resident block."""
    M = x.shape[0]
    N = w.shape[1]
    return pl.pallas_call(
        _dense_kernel,
        out_shape=jax.ShapeDtypeStruct((M, N), jnp.float32),
    )(x, w, b)


def _gru_gates(gx, gh, h, hidden):
    """PyTorch GRUCell gate math with merged (B, 3H) projections (order r,z,n)."""
    r = jax.nn.sigmoid(gx[:, :hidden] + gh[:, :hidden])
    z = jax.nn.sigmoid(gx[:, hidden:2 * hidden] + gh[:, hidden:2 * hidden])
    n = jnp.tanh(gx[:, 2 * hidden:] + r * gh[:, 2 * hidden:])
    return (1.0 - z) * n + z * h


def _gru_bidir_kernel(gx_ref, whh_ref, bhh_ref, mask_ref, out_ref, hn_ref, h_scr):
    """One grid step == one timestep of one direction of a GRU layer.

    grid = (D, T); direction d is "parallel" (megacore), time t is "arbitrary".
    Time reversal for the backward direction is handled in the index_maps, so
    both directions read/write the SAME HBM arrays at the original time index.

    gx_ref  : (1, 1, B, 3H)  precomputed x @ Wih + bih at this (dir, src_time)
    whh_ref : (1, H, 3H)     resident across the whole time loop
    bhh_ref : (1, 1, 3H)     resident
    mask_ref: (1, B, 1)      1.0 = valid step, 0.0 = padding (packed-seq emulation)
    out_ref : (1, 1, B, H)   per-(dir, src_time) output (zero at padded steps)
    hn_ref  : (1, B, H)      final hidden state of this direction
    h_scr   : (B, H) VMEM hidden state carried across time steps
    """
    t = pl.program_id(1)

    @pl.when(t == 0)
    def _():
        h_scr[...] = jnp.zeros_like(h_scr)

    h = h_scr[...]
    hidden = h.shape[-1]
    gx = gx_ref[0, 0]                                        # (B, 3H)
    gh = jnp.dot(h, whh_ref[0], preferred_element_type=jnp.float32) + bhh_ref[0]
    h_new = _gru_gates(gx, gh, h, hidden)

    m = mask_ref[0]                      # (B, 1)
    h = m * h_new + (1.0 - m) * h        # padded steps do not update h
    h_scr[...] = h
    out_ref[0, 0] = m * h                # padded steps emit zeros (pad_packed)

    @pl.when(t == pl.num_programs(1) - 1)
    def _():
        hn_ref[0] = h_scr[...]


def gru_layer_bidir(gx, whh, bhh, mask):
    """Fused (bi)directional masked GRU layer over time.

    gx  : (D, T, B, 3H)  precomputed input projections (NOT time-reversed)
    whh : (D, H, 3H), bhh: (D, 1, 3H), mask: (T, B, 1)
    Returns out (D, T, B, H) in original time order, hn (D, B, H).
    """
    D, T, B, G = gx.shape
    H = G // 3

    def src_time(d, t):
        # forward direction (d == 0) reads source time t; backward reads T-1-t
        return d * (T - 1 - t) + (1 - d) * t

    out, hn = pl.pallas_call(
        _gru_bidir_kernel,
        grid=(D, T),
        out_shape=(jax.ShapeDtypeStruct((D, T, B, H), jnp.float32),
                   jax.ShapeDtypeStruct((D, B, H), jnp.float32)),
        in_specs=[pl.BlockSpec((1, 1, B, G), lambda d, t: (d, src_time(d, t), 0, 0)),
                  pl.BlockSpec((1, H, G), lambda d, t: (d, 0, 0)),
                  pl.BlockSpec((1, 1, G), lambda d, t: (d, 0, 0)),
                  pl.BlockSpec((1, B, 1), lambda d, t: (src_time(d, t), 0, 0))],
        out_specs=(pl.BlockSpec((1, 1, B, H), lambda d, t: (d, src_time(d, t), 0, 0)),
                   pl.BlockSpec((1, B, H), lambda d, t: (d, 0, 0))),
        scratch_shapes=[pltpu.VMEM((B, H), jnp.float32)],
        compiler_params=pltpu.CompilerParams(
            dimension_semantics=("parallel", "arbitrary")),
    )(gx, whh, bhh, mask)
    return out, hn


def _make_decoder_kernel(num_layers):
    def kernel(gx0_ref, h0_ref, wih_ref, bih_ref, whh_ref, bhh_ref,
               w1_ref, w2_ref, ctx_ref, out_ref, hn_ref, h_scr):
        """One grid step == one decoder timestep (StackingGRUCell + attention).

        gx0_ref: (1, B, 3H)   layer-0 input projection (precomputed, per step)
        h0_ref : (L, B, H)    initial hidden states (resident)
        wih_ref: (max(L-1,1), H, 3H)  input weights for layers >= 1 (resident)
        bih_ref: (max(L-1,1), 1, 3H)
        whh_ref: (L, H, 3H)   recurrent weights (resident)
        bhh_ref: (L, 1, 3H)
        w1_ref : (H, H)       attention L1.weight.T (resident)
        w2_ref : (2, H, H)    [L2.weight[:, :H].T, L2.weight[:, H:].T] (resident)
        ctx_ref: (B, S, H)    encoder context, resident across ALL decoder steps
        out_ref: (1, B, H)    per-timestep output
        hn_ref : (L, B, H)    final hidden states (written once, at last step)
        h_scr  : (L, B, H) VMEM per-layer hidden states across grid steps
        """
        t = pl.program_id(0)

        @pl.when(t == 0)
        def _():
            h_scr[...] = h0_ref[...]

        hidden = h_scr.shape[-1]

        def step(gx, h, whh, bhh):
            gh = jnp.dot(h, whh, preferred_element_type=jnp.float32) + bhh
            return _gru_gates(gx, gh, h, hidden)

        # layer 0 (input projection precomputed outside the loop)
        o = step(gx0_ref[0], h_scr[0], whh_ref[0], bhh_ref[0])
        h_scr[0] = o
        # layers 1..L-1; dropout(p=0) between layers == identity
        for l in range(1, num_layers):
            gx = (jnp.dot(o, wih_ref[l - 1], preferred_element_type=jnp.float32)
                  + bih_ref[l - 1])
            o = step(gx, h_scr[l], whh_ref[l], bhh_ref[l])
            h_scr[l] = o

        # GlobalAttention: a = softmax(H (W1 q)),  c = tanh(W2 [a H, q])
        q = o                                                          # (B, H)
        ctx = ctx_ref[...]                                             # (B, S, H)
        q1 = jnp.dot(q, w1_ref[...],
                     preferred_element_type=jnp.float32)[:, None, :]   # (B, 1, H)
        scores = jnp.einsum('bqh,bsh->bqs', q1, ctx,
                            preferred_element_type=jnp.float32)        # (B, 1, S)
        scores = scores - jnp.max(scores, axis=-1, keepdims=True)
        e = jnp.exp(scores)
        a = e * pl.reciprocal(jnp.sum(e, axis=-1, keepdims=True), approx=True)
        c = jnp.einsum('bqs,bsh->bqh', a, ctx,
                       preferred_element_type=jnp.float32)[:, 0, :]    # (B, H)
        attn = jnp.tanh(
            jnp.dot(c, w2_ref[0], preferred_element_type=jnp.float32)
            + jnp.dot(q, w2_ref[1], preferred_element_type=jnp.float32))
        out_ref[0] = attn                    # dropout(p=0) on output == identity

        @pl.when(t == pl.num_programs(0) - 1)
        def _():
            hn_ref[...] = h_scr[...]
    return kernel


def decoder_scan(gx0, h0, wih_rest, bih_rest, whh_all, bhh_all, w1, w2, ctx,
                 num_layers):
    Td, B, G = gx0.shape
    H = G // 3
    L = num_layers
    Lr = wih_rest.shape[0]
    S = ctx.shape[1]
    out, hn = pl.pallas_call(
        _make_decoder_kernel(L),
        grid=(Td,),
        out_shape=(jax.ShapeDtypeStruct((Td, B, H), jnp.float32),
                   jax.ShapeDtypeStruct((L, B, H), jnp.float32)),
        in_specs=[pl.BlockSpec((1, B, G), lambda t: (t, 0, 0)),
                  pl.BlockSpec((L, B, H), lambda t: (0, 0, 0)),
                  pl.BlockSpec((Lr, H, G), lambda t: (0, 0, 0)),
                  pl.BlockSpec((Lr, 1, G), lambda t: (0, 0, 0)),
                  pl.BlockSpec((L, H, G), lambda t: (0, 0, 0)),
                  pl.BlockSpec((L, 1, G), lambda t: (0, 0, 0)),
                  pl.BlockSpec((H, H), lambda t: (0, 0)),
                  pl.BlockSpec((2, H, H), lambda t: (0, 0, 0)),
                  pl.BlockSpec((B, S, H), lambda t: (0, 0, 0))],
        out_specs=(pl.BlockSpec((1, B, H), lambda t: (t, 0, 0)),
                   pl.BlockSpec((L, B, H), lambda t: (0, 0, 0))),
        scratch_shapes=[pltpu.VMEM((L, B, H), jnp.float32)],
        compiler_params=pltpu.CompilerParams(dimension_semantics=("arbitrary",)),
    )(gx0, h0, wih_rest, bih_rest, whh_all, bhh_all, w1, w2, ctx)
    return out, hn


# -------------------------- parameter construction -------------------------

def _uniform(key, shape, scale):
    return jax.random.uniform(key, shape, jnp.float32, -scale, scale)


def init_params(key, vocab_size, embedding_size, hidden_size, num_layers,
                bidirectional=True):
    num_directions = 2 if bidirectional else 1
    assert hidden_size % num_directions == 0
    enc_hidden = hidden_size // num_directions
    keys = iter(jax.random.split(key, 256))

    emb = _uniform(next(keys), (vocab_size, embedding_size), 1.0)
    emb = emb.at[PAD].set(0.0)                       # padding_idx

    def gru_dir(in_size, h_size):
        # merged-gate layout, PyTorch gate order (r, z, n) along the last axis
        s = 1.0 / float(h_size) ** 0.5
        return dict(
            wih=_uniform(next(keys), (in_size, 3 * h_size), s),
            whh=_uniform(next(keys), (h_size, 3 * h_size), s),
            bih=_uniform(next(keys), (1, 3 * h_size), s),
            bhh=_uniform(next(keys), (1, 3 * h_size), s),
        )

    # encoder: per layer, both directions' Wih/bih concatenated along the output
    # axis (one big matmul), Whh/bhh stacked along a leading direction axis.
    encoder = []
    for l in range(num_layers):
        in_size = embedding_size if l == 0 else enc_hidden * num_directions
        dirs = [gru_dir(in_size, enc_hidden) for _ in range(num_directions)]
        encoder.append(dict(
            wih_cat=jnp.concatenate([d["wih"] for d in dirs], axis=1),
            bih_cat=jnp.concatenate([d["bih"] for d in dirs], axis=1),
            whh=jnp.stack([d["whh"] for d in dirs]),
            bhh=jnp.stack([d["bhh"] for d in dirs]),
        ))

    decoder = []
    for l in range(num_layers):
        in_size = embedding_size if l == 0 else hidden_size
        decoder.append(gru_dir(in_size, hidden_size))

    H = hidden_size
    s = 1.0 / float(H) ** 0.5
    attn = dict(w1=_uniform(next(keys), (H, H), s),
                w2=_uniform(next(keys), (2, H, H), s))

    # pre-stacked decoder weights so the fused decoder kernel keeps them resident
    if num_layers > 1:
        dec_wih_rest = jnp.stack([decoder[l]["wih"] for l in range(1, num_layers)])
        dec_bih_rest = jnp.stack([decoder[l]["bih"] for l in range(1, num_layers)])
    else:
        dec_wih_rest = jnp.zeros((1, H, 3 * H), jnp.float32)   # unused placeholder
        dec_bih_rest = jnp.zeros((1, 1, 3 * H), jnp.float32)
    dec_whh = jnp.stack([decoder[l]["whh"] for l in range(num_layers)])
    dec_bhh = jnp.stack([decoder[l]["bhh"] for l in range(num_layers)])

    params = dict(embedding=emb, encoder=encoder, attn=attn,
                  dec_wih0=decoder[0]["wih"], dec_bih0=decoder[0]["bih"],
                  dec_wih_rest=dec_wih_rest, dec_bih_rest=dec_bih_rest,
                  dec_whh=dec_whh, dec_bhh=dec_bhh)
    cfg = dict(num_layers=num_layers, num_directions=num_directions,
               enc_hidden=enc_hidden, hidden_size=hidden_size)
    return params, cfg


# ------------------------------- forward pass -------------------------------

def encoder_forward(params, cfg, src, lengths):
    """Bidirectional multi-layer GRU with packed-sequence semantics (masking)."""
    T, B = src.shape
    D = cfg["num_directions"]
    G = 3 * cfg["enc_hidden"]
    emb = params["embedding"][src]                                   # (T, B, E)
    mask = (jnp.arange(T)[:, None] < lengths.reshape(1, B)).astype(jnp.float32)
    mask = mask[:, :, None]                                          # (T, B, 1)

    layer_in = emb
    hns = []
    for l in range(cfg["num_layers"]):
        p = params["encoder"][l]
        Tl, Bl, I = layer_in.shape
        # non-recurrent input projection for ALL timesteps AND both directions
        # in one matmul
        gx = dense(layer_in.reshape(Tl * Bl, I), p["wih_cat"], p["bih_cat"])
        gx = gx.reshape(Tl, Bl, D, G).transpose(2, 0, 1, 3)          # (D, T, B, G)
        out, hn = gru_layer_bidir(gx, p["whh"], p["bhh"], mask)
        hns.append(hn)                      # (D, B, enc_hidden)
        if D == 2:
            layer_in = jnp.concatenate([out[0], out[1]], axis=-1)
        else:
            layer_in = out[0]
    hn = jnp.concatenate(hns, axis=0)       # (num_layers*num_directions, B, enc_hidden)
    return hn, layer_in                     # layer_in: (T, B, hidden_size)


def encoder_hn2decoder_h0(hn, num_layers, num_directions):
    if num_directions == 2:
        _, B, Hd = hn.shape
        return (hn.reshape(num_layers, 2, B, Hd)
                  .transpose(0, 2, 1, 3)
                  .reshape(num_layers, B, Hd * 2))
    return hn


def decoder_forward(params, cfg, trg_in, h0, Hctx):
    Td, B = trg_in.shape
    emb = params["embedding"][trg_in]                 # (Td, B, E)
    E = emb.shape[-1]
    gx0 = dense(emb.reshape(Td * B, E), params["dec_wih0"],
                params["dec_bih0"]).reshape(Td, B, -1)
    ctx = jnp.transpose(Hctx, (1, 0, 2))              # H.transpose(0,1) -> (B, S, H)
    out, hn = decoder_scan(gx0, h0,
                           params["dec_wih_rest"], params["dec_bih_rest"],
                           params["dec_whh"], params["dec_bhh"],
                           params["attn"]["w1"], params["attn"]["w2"], ctx,
                           cfg["num_layers"])
    return out, hn


def encoder_decoder_forward(params, cfg, src, lengths, trg):
    encoder_hn, H = encoder_forward(params, cfg, src, lengths)
    decoder_h0 = encoder_hn2decoder_h0(encoder_hn, cfg["num_layers"],
                                       cfg["num_directions"])
    output, _decoder_hn = decoder_forward(params, cfg, trg[:-1], decoder_h0, H)
    return output, decoder_h0


# ----------------------------------- main -----------------------------------

if __name__ == "__main__":
    vocab_size, embedding_size, hidden_size, num_layers = 20, 16, 32, 2
    bidirectional = True                      # dropout=0 -> Dropout is identity

    params, cfg = init_params(jax.random.PRNGKey(0), vocab_size, embedding_size,
                              hidden_size, num_layers, bidirectional)

    T_src, T_trg, B = 8, 6, 2
    k_src, k_trg = jax.random.split(jax.random.PRNGKey(0))
    src = jax.random.randint(k_src, (T_src, B), 1, vocab_size, dtype=jnp.int32)
    trg = jax.random.randint(k_trg, (T_trg, B), 1, vocab_size, dtype=jnp.int32)
    lengths = jnp.array([[T_src, T_src - 2]], dtype=jnp.int32)   # (1, batch), desc
    src = src.at[T_src - 2:, 1].set(PAD)                          # pad the short seq

    @jax.jit
    def forward(params, src, lengths, trg):
        return encoder_decoder_forward(params, cfg, src, lengths, trg)

    output, decoder_h0 = forward(params, src, lengths, trg)
    jax.block_until_ready((output, decoder_h0))

    assert output.shape == (T_trg - 1, B, hidden_size)
    assert decoder_h0.shape == (num_layers, B, hidden_size)
    assert bool(jnp.all(jnp.isfinite(output))) and bool(jnp.all(jnp.isfinite(decoder_h0)))
    print("KERNEL_OK")
</pallas_src>

<mosaic_0001>
module attributes {stable_mosaic.version = 11 : i64} {
  func.func @_dense_kernel(%arg0: memref<10x16xf32, #tpu.memory_space<vmem>>, %arg1: memref<16x96xf32, #tpu.memory_space<vmem>>, %arg2: memref<1x96xf32, #tpu.memory_space<vmem>>, %arg3: memref<10x96xf32, #tpu.memory_space<vmem>>) attributes {dimension_semantics = [], scalar_prefetch = 0 : i64, scratch_operands = 0 : i64, tpu.core_type = #tpu.core_type<tc>} {
    %c0 = arith.constant 0 : index
    %c0_0 = arith.constant 0 : index
    %0 = vector.load %arg0[%c0, %c0_0] : memref<10x16xf32, #tpu.memory_space<vmem>>, vector<10x16xf32>
    %c0_1 = arith.constant 0 : index
    %c0_2 = arith.constant 0 : index
    %1 = vector.load %arg1[%c0_1, %c0_2] : memref<16x96xf32, #tpu.memory_space<vmem>>, vector<16x96xf32>
    %cst = arith.constant dense<0.000000e+00> : vector<10x96xf32>
    %2 = tpu.matmul %0, %1, %cst {dimension_numbers = #tpu.dot_dimension_numbers<[1], [0], [0], [1], [0, 0, 1, 1], [], []>} : vector<10x16xf32>, vector<16x96xf32>, vector<10x96xf32> -> vector<10x96xf32>
    %c0_3 = arith.constant 0 : index
    %c0_4 = arith.constant 0 : index
    %3 = vector.load %arg2[%c0_3, %c0_4] : memref<1x96xf32, #tpu.memory_space<vmem>>, vector<1x96xf32>
    %4 = vector.broadcast %3 : vector<1x96xf32> to vector<10x96xf32>
    %5 = arith.addf %2, %4 : vector<10x96xf32>
    %c0_5 = arith.constant 0 : index
    %c0_6 = arith.constant 0 : index
    %6 = vector.load %arg3[%c0_5, %c0_6] : memref<10x96xf32, #tpu.memory_space<vmem>>, vector<10x96xf32>
    tpu.vector_store %arg3[%c0_5, %c0_6], %5 {strides = array<i32>} : memref<10x96xf32, #tpu.memory_space<vmem>>, vector<10x96xf32>,
    return
  }
}

module attributes {stable_mosaic.version = 11 : i64} {
  func.func @_dense_kernel(%arg0: memref<16x16xf32, #tpu.memory_space<vmem>>, %arg1: memref<16x96xf32, #tpu.memory_space<vmem>>, %arg2: memref<1x96xf32, #tpu.memory_space<vmem>>, %arg3: memref<16x96xf32, #tpu.memory_space<vmem>>) attributes {dimension_semantics = [], scalar_prefetch = 0 : i64, scratch_operands = 0 : i64, tpu.core_type = #tpu.core_type<tc>} {
    %c0 = arith.constant 0 : index
    %c0_0 = arith.constant 0 : index
    %0 = vector.load %arg0[%c0, %c0_0] : memref<16x16xf32, #tpu.memory_space<vmem>>, vector<16x16xf32>
    %c0_1 = arith.constant 0 : index
    %c0_2 = arith.constant 0 : index
    %1 = vector.load %arg1[%c0_1, %c0_2] : memref<16x96xf32, #tpu.memory_space<vmem>>, vector<16x96xf32>
    %cst = arith.constant dense<0.000000e+00> : vector<16x96xf32>
    %2 = tpu.matmul %0, %1, %cst {dimension_numbers = #tpu.dot_dimension_numbers<[1], [0], [0], [1], [0, 0, 1, 1], [], []>} : vector<16x16xf32>, vector<16x96xf32>, vector<16x96xf32> -> vector<16x96xf32>
    %c0_3 = arith.constant 0 : index
    %c0_4 = arith.constant 0 : index
    %3 = vector.load %arg2[%c0_3, %c0_4] : memref<1x96xf32, #tpu.memory_space<vmem>>, vector<1x96xf32>
    %4 = vector.broadcast %3 : vector<1x96xf32> to vector<16x96xf32>
    %5 = arith.addf %2, %4 : vector<16x96xf32>
    %c0_5 = arith.constant 0 : index
    %c0_6 = arith.constant 0 : index
    %6 = vector.load %arg3[%c0_5, %c0_6] : memref<16x96xf32, #tpu.memory_space<vmem>>, vector<16x96xf32>
    tpu.vector_store %arg3[%c0_5, %c0_6], %5 {strides = array<i32>} : memref<16x96xf32, #tpu.memory_space<vmem>>, vector<16x96xf32>,
    return
  }
}

module attributes {stable_mosaic.version = 11 : i64} {
  func.func @_gru_bidir_kernel(%arg0: i32, %arg1: i32, %arg2: memref<1x1x2x48xf32, #tpu.memory_space<vmem>>, %arg3: memref<1x16x48xf32, #tpu.memory_space<vmem>>, %arg4: memref<1x1x48xf32, #tpu.memory_space<vmem>>, %arg5: memref<1x2x1xf32, #tpu.memory_space<vmem>>, %arg6: memref<1x1x2x16xf32, #tpu.memory_space<vmem>>, %arg7: memref<1x2x16xf32, #tpu.memory_space<vmem>>, %arg8: memref<2x16xf32, #tpu.memory_space<vmem>>) attributes {dimension_semantics = [#tpu.dimension_semantics<parallel>, #tpu.dimension_semantics<arbitrary>], iteration_bounds = array<i64: 2, 8>, scalar_prefetch = 0 : i64, scratch_operands = 1 : i64, tpu.core_type = #tpu.core_type<tc>, window_params = [{transform_indices = @transform_0, window_bounds = array<i64: 1, 1, 2, 48>}, {transform_indices = @transform_1, window_bounds = array<i64: 1, 16, 48>}, {transform_indices = @transform_2, window_bounds = array<i64: 1, 1, 48>}, {transform_indices = @transform_3, window_bounds = array<i64: 1, 2, 1>}, {transform_indices = @transform_4, window_bounds = array<i64: 1, 1, 2, 16>}, {transform_indices = @transform_5, window_bounds = array<i64: 1, 2, 16>}]} {
    %c0_i32 = arith.constant 0 : i32
    %0 = arith.cmpi eq, %arg1, %c0_i32 : i32
    %1 = arith.extui %0 : i1 to i32
    %c0_i32_0 = arith.constant 0 : i32
    %2 = arith.cmpi ne, %1, %c0_i32_0 : i32
    scf.if %2 {
      %cst_26 = arith.constant 0.000000e+00 : f32
      %57 = vector.broadcast %cst_26 : f32 to vector<2x16xf32>
      %c0_27 = arith.constant 0 : index
      %c0_28 = arith.constant 0 : index
      %58 = vector.load %arg8[%c0_27, %c0_28] : memref<2x16xf32, #tpu.memory_space<vmem>>, vector<2x16xf32>
      tpu.vector_store %arg8[%c0_27, %c0_28], %57 {strides = array<i32>} : memref<2x16xf32, #tpu.memory_space<vmem>>, vector<2x16xf32>,
    } else {
    }
    %c0 = arith.constant 0 : index
    %c0_1 = arith.constant 0 : index
    %3 = vector.load %arg8[%c0, %c0_1] : memref<2x16xf32, #tpu.memory_space<vmem>>, vector<2x16xf32>
    %c0_2 = arith.constant 0 : index
    %c0_3 = arith.constant 0 : index
    %c0_4 = arith.constant 0 : index
    %c0_5 = arith.constant 0 : index
    %4 = vector.load %arg2[%c0_2, %c0_3, %c0_4, %c0_5] : memref<1x1x2x48xf32, #tpu.memory_space<vmem>>, vector<1x1x2x48xf32>
    %5 = vector.shape_cast %4 : vector<1x1x2x48xf32> to vector<2x48xf32>
    %c0_6 = arith.constant 0 : index
    %c0_7 = arith.constant 0 : index
    %c0_8 = arith.constant 0 : index
    %6 = vector.load %arg3[%c0_6, %c0_7, %c0_8] : memref<1x16x48xf32, #tpu.memory_space<vmem>>, vector<1x16x48xf32>
    %7 = vector.shape_cast %6 : vector<1x16x48xf32> to vector<16x48xf32>
    %cst = arith.constant dense<0.000000e+00> : vector<2x48xf32>
    %8 = tpu.matmul %3, %7, %cst {dimension_numbers = #tpu.dot_dimension_numbers<[1], [0], [0], [1], [0, 0, 1, 1], [], []>} : vector<2x16xf32>, vector<16x48xf32>, vector<2x48xf32> -> vector<2x48xf32>
    %c0_9 = arith.constant 0 : index
    %c0_10 = arith.constant 0 : index
    %c0_11 = arith.constant 0 : index
    %9 = vector.load %arg4[%c0_9, %c0_10, %c0_11] : memref<1x1x48xf32, #tpu.memory_space<vmem>>, vector<1x1x48xf32>
    %10 = vector.shape_cast %9 : vector<1x1x48xf32> to vector<1x48xf32>
    %11 = vector.broadcast %10 : vector<1x48xf32> to vector<2x48xf32>
    %12 = arith.addf %8, %11 : vector<2x48xf32>
    %13 = vector.extract_strided_slice %5 {offsets = [0, 0], sizes = [2, 16], strides = [1, 1]} : vector<2x48xf32> to vector<2x16xf32>
    %14 = vector.extract_strided_slice %12 {offsets = [0, 0], sizes = [2, 16], strides = [1, 1]} : vector<2x48xf32> to vector<2x16xf32>
    %15 = arith.addf %13, %14 : vector<2x16xf32>
    %16 = arith.negf %15 : vector<2x16xf32>
    %17 = math.exp %16 : vector<2x16xf32>
    %cst_12 = arith.constant 1.000000e+00 : f32
    %18 = vector.broadcast %cst_12 : f32 to vector<2x16xf32>
    %19 = arith.addf %18, %17 : vector<2x16xf32>
    %20 = arith.divf %18, %19 : vector<2x16xf32>
    %21 = vector.extract_strided_slice %5 {offsets = [0, 16], sizes = [2, 16], strides = [1, 1]} : vector<2x48xf32> to vector<2x16xf32>
    %22 = vector.extract_strided_slice %12 {offsets = [0, 16], sizes = [2, 16], strides = [1, 1]} : vector<2x48xf32> to vector<2x16xf32>
    %23 = arith.addf %21, %22 : vector<2x16xf32>
    %24 = arith.negf %23 : vector<2x16xf32>
    %25 = math.exp %24 : vector<2x16xf32>
    %cst_13 = arith.constant 1.000000e+00 : f32
    %26 = vector.broadcast %cst_13 : f32 to vector<2x16xf32>
    %27 = arith.addf %26, %25 : vector<2x16xf32>
    %28 = arith.divf %26, %27 : vector<2x16xf32>
    %29 = vector.extract_strided_slice %5 {offsets = [0, 32], sizes = [2, 16], strides = [1, 1]} : vector<2x48xf32> to vector<2x16xf32>
    %30 = vector.extract_strided_slice %12 {offsets = [0, 32], sizes = [2, 16], strides = [1, 1]} : vector<2x48xf32> to vector<2x16xf32>
    %31 = arith.mulf %20, %30 : vector<2x16xf32>
    %32 = arith.addf %29, %31 : vector<2x16xf32>
    %33 = math.tanh %32 : vector<2x16xf32>
    %cst_14 = arith.constant 1.000000e+00 : f32
    %34 = vector.broadcast %cst_14 : f32 to vector<2x16xf32>
    %35 = arith.subf %34, %28 : vector<2x16xf32>
    %36 = arith.mulf %35, %33 : vector<2x16xf32>
    %37 = arith.mulf %28, %3 : vector<2x16xf32>
    %38 = arith.addf %36, %37 : vector<2x16xf32>
    %c0_15 = arith.constant 0 : index
    %c0_16 = arith.constant 0 : index
    %c0_17 = arith.constant 0 : index
    %39 = vector.load %arg5[%c0_15, %c0_16, %c0_17] : memref<1x2x1xf32, #tpu.memory_space<vmem>>, vector<1x2x1xf32>
    %40 = vector.shape_cast %39 : vector<1x2x1xf32> to vector<2x1xf32>
    %41 = vector.broadcast %40 : vector<2x1xf32> to vector<2x16xf32>
    %42 = arith.mulf %41, %38 : vector<2x16xf32>
    %cst_18 = arith.constant 1.000000e+00 : f32
    %43 = vector.broadcast %cst_18 : f32 to vector<2x1xf32>
    %44 = arith.subf %43, %40 : vector<2x1xf32>
    %45 = vector.broadcast %44 : vector<2x1xf32> to vector<2x16xf32>
    %46 = arith.mulf %45, %3 : vector<2x16xf32>
    %47 = arith.addf %42, %46 : vector<2x16xf32>
    %c0_19 = arith.constant 0 : index
    %c0_20 = arith.constant 0 : index
    %48 = vector.load %arg8[%c0_19, %c0_20] : memref<2x16xf32, #tpu.memory_space<vmem>>, vector<2x16xf32>
    tpu.vector_store %arg8[%c0_19, %c0_20], %47 {strides = array<i32>} : memref<2x16xf32, #tpu.memory_space<vmem>>, vector<2x16xf32>,
    %49 = vector.broadcast %40 : vector<2x1xf32> to vector<2x16xf32>
    %50 = arith.mulf %49, %47 : vector<2x16xf32>
    %c0_21 = arith.constant 0 : index
    %c0_22 = arith.constant 0 : index
    %c0_23 = arith.constant 0 : index
    %c0_24 = arith.constant 0 : index
    %51 = vector.load %arg6[%c0_21, %c0_22, %c0_23, %c0_24] : memref<1x1x2x16xf32, #tpu.memory_space<vmem>>, vector<1x1x2x16xf32>
    %52 = vector.shape_cast %51 : vector<1x1x2x16xf32> to vector<2x16xf32>
    %53 = vector.shape_cast %50 : vector<2x16xf32> to vector<1x1x2x16xf32>
    tpu.vector_store %arg6[%c0_21, %c0_22, %c0_23, %c0_24], %53 {strides = array<i32>} : memref<1x1x2x16xf32, #tpu.memory_space<vmem>>, vector<1x1x2x16xf32>,
    %c7_i32 = arith.constant 7 : i32
    %54 = arith.cmpi eq, %arg1, %c7_i32 : i32
    %55 = arith.extui %54 : i1 to i32
    %c0_i32_25 = arith.constant 0 : i32
    %56 = arith.cmpi ne, %55, %c0_i32_25 : i32
    scf.if %56 {
      %c0_26 = arith.constant 0 : index
      %c0_27 = arith.constant 0 : index
      %57 = vector.load %arg8[%c0_26, %c0_27] : memref<2x16xf32, #tpu.memory_space<vmem>>, vector<2x16xf32>
      %c0_28 = arith.constant 0 : index
      %c0_29 = arith.constant 0 : index
      %c0_30 = arith.constant 0 : index
      %58 = vector.load %arg7[%c0_28, %c0_29, %c0_30] : memref<1x2x16xf32, #tpu.memory_space<vmem>>, vector<1x2x16xf32>
      %59 = vector.shape_cast %58 : vector<1x2x16xf32> to vector<2x16xf32>
      %60 = vector.shape_cast %57 : vector<2x16xf32> to vector<1x2x16xf32>
      tpu.vector_store %arg7[%c0_28, %c0_29, %c0_30], %60 {strides = array<i32>} : memref<1x2x16xf32, #tpu.memory_space<vmem>>, vector<1x2x16xf32>,
    } else {
    }
    return
  }
  func.func @transform_0(%arg0: i32, %arg1: i32) -> (i32, i32, i32, i32) {
    %c7_i32 = arith.constant 7 : i32
    %0 = arith.subi %c7_i32, %arg1 : i32
    %1 = arith.muli %arg0, %0 : i32
    %c1_i32 = arith.constant 1 : i32
    %2 = arith.subi %c1_i32, %arg0 : i32
    %3 = arith.muli %2, %arg1 : i32
    %4 = arith.addi %1, %3 : i32
    %c0_i32 = arith.constant 0 : i32
    %c0_i32_0 = arith.constant 0 : i32
    %c0_i32_1 = arith.constant 0 : i32
    return %arg0, %4, %c0_i32, %c0_i32_0 : i32, i32, i32, i32
  }
  func.func @transform_1(%arg0: i32, %arg1: i32) -> (i32, i32, i32) {
    %c0_i32 = arith.constant 0 : i32
    %c0_i32_0 = arith.constant 0 : i32
    %c0_i32_1 = arith.constant 0 : i32
    return %arg0, %c0_i32, %c0_i32_0 : i32, i32, i32
  }
  func.func @transform_2(%arg0: i32, %arg1: i32) -> (i32, i32, i32) {
    %c0_i32 = arith.constant 0 : i32
    %c0_i32_0 = arith.constant 0 : i32
    %c0_i32_1 = arith.constant 0 : i32
    return %arg0, %c0_i32, %c0_i32_0 : i32, i32, i32
  }
  func.func @transform_3(%arg0: i32, %arg1: i32) -> (i32, i32, i32) {
    %c7_i32 = arith.constant 7 : i32
    %0 = arith.subi %c7_i32, %arg1 : i32
    %1 = arith.muli %arg0, %0 : i32
    %c1_i32 = arith.constant 1 : i32
    %2 = arith.subi %c1_i32, %arg0 : i32
    %3 = arith.muli %2, %arg1 : i32
    %4 = arith.addi %1, %3 : i32
    %c0_i32 = arith.constant 0 : i32
    %c0_i32_0 = arith.constant 0 : i32
    %c0_i32_1 = arith.constant 0 : i32
    return %4, %c0_i32, %c0_i32_0 : i32, i32, i32
  }
  func.func @transform_4(%arg0: i32, %arg1: i32) -> (i32, i32, i32, i32) {
    %c7_i32 = arith.constant 7 : i32
    %0 = arith.subi %c7_i32, %arg1 : i32
    %1 = arith.muli %arg0, %0 : i32
    %c1_i32 = arith.constant 1 : i32
    %2 = arith.subi %c1_i32, %arg0 : i32
    %3 = arith.muli %2, %arg1 : i32
    %4 = arith.addi %1, %3 : i32
    %c0_i32 = arith.constant 0 : i32
    %c0_i32_0 = arith.constant 0 : i32
    %c0_i32_1 = arith.constant 0 : i32
    return %arg0, %4, %c0_i32, %c0_i32_0 : i32, i32, i32, i32
  }
  func.func @transform_5(%arg0: i32, %arg1: i32) -> (i32, i32, i32) {
    %c0_i32 = arith.constant 0 : i32
    %c0_i32_0 = arith.constant 0 : i32
    %c0_i32_1 = arith.constant 0 : i32
    return %arg0, %c0_i32, %c0_i32_0 : i32, i32, i32
  }
}

module attributes {stable_mosaic.version = 11 : i64} {
  func.func @_dense_kernel(%arg0: memref<16x32xf32, #tpu.memory_space<vmem>>, %arg1: memref<32x96xf32, #tpu.memory_space<vmem>>, %arg2: memref<1x96xf32, #tpu.memory_space<vmem>>, %arg3: memref<16x96xf32, #tpu.memory_space<vmem>>) attributes {dimension_semantics = [], scalar_prefetch = 0 : i64, scratch_operands = 0 : i64, tpu.core_type = #tpu.core_type<tc>} {
    %c0 = arith.constant 0 : index
    %c0_0 = arith.constant 0 : index
    %0 = vector.load %arg0[%c0, %c0_0] : memref<16x32xf32, #tpu.memory_space<vmem>>, vector<16x32xf32>
    %c0_1 = arith.constant 0 : index
    %c0_2 = arith.constant 0 : index
    %1 = vector.load %arg1[%c0_1, %c0_2] : memref<32x96xf32, #tpu.memory_space<vmem>>, vector<32x96xf32>
    %cst = arith.constant dense<0.000000e+00> : vector<16x96xf32>
    %2 = tpu.matmul %0, %1, %cst {dimension_numbers = #tpu.dot_dimension_numbers<[1], [0], [0], [1], [0, 0, 1, 1], [], []>} : vector<16x32xf32>, vector<32x96xf32>, vector<16x96xf32> -> vector<16x96xf32>
    %c0_3 = arith.constant 0 : index
    %c0_4 = arith.constant 0 : index
    %3 = vector.load %arg2[%c0_3, %c0_4] : memref<1x96xf32, #tpu.memory_space<vmem>>, vector<1x96xf32>
    %4 = vector.broadcast %3 : vector<1x96xf32> to vector<16x96xf32>
    %5 = arith.addf %2, %4 : vector<16x96xf32>
    %c0_5 = arith.constant 0 : index
    %c0_6 = arith.constant 0 : index
    %6 = vector.load %arg3[%c0_5, %c0_6] : memref<16x96xf32, #tpu.memory_space<vmem>>, vector<16x96xf32>
    tpu.vector_store %arg3[%c0_5, %c0_6], %5 {strides = array<i32>} : memref<16x96xf32, #tpu.memory_space<vmem>>, vector<16x96xf32>,
    return
  }
}

module attributes {stable_mosaic.version = 11 : i64} {
  func.func @kernel(%arg0: i32, %arg1: memref<1x2x96xf32, #tpu.memory_space<vmem>>, %arg2: memref<2x2x32xf32, #tpu.memory_space<vmem>>, %arg3: memref<1x32x96xf32, #tpu.memory_space<vmem>>, %arg4: memref<1x1x96xf32, #tpu.memory_space<vmem>>, %arg5: memref<2x32x96xf32, #tpu.memory_space<vmem>>, %arg6: memref<2x1x96xf32, #tpu.memory_space<vmem>>, %arg7: memref<32x32xf32, #tpu.memory_space<vmem>>, %arg8: memref<2x32x32xf32, #tpu.memory_space<vmem>>, %arg9: memref<2x8x32xf32, #tpu.memory_space<vmem>>, %arg10: memref<1x2x32xf32, #tpu.memory_space<vmem>>, %arg11: memref<2x2x32xf32, #tpu.memory_space<vmem>>, %arg12: memref<2x2x32xf32, #tpu.memory_space<vmem>>) attributes {dimension_semantics = [#tpu.dimension_semantics<arbitrary>], iteration_bounds = array<i64: 5>, scalar_prefetch = 0 : i64, scratch_operands = 1 : i64, tpu.core_type = #tpu.core_type<tc>, window_params = [{transform_indices = @transform_0, window_bounds = array<i64: 1, 2, 96>}, {pipeline_mode = #tpu.pipeline_mode<synchronous>, transform_indices = @transform_1, window_bounds = array<i64: 2, 2, 32>}, {pipeline_mode = #tpu.pipeline_mode<synchronous>, transform_indices = @transform_2, window_bounds = array<i64: 1, 32, 96>}, {pipeline_mode = #tpu.pipeline_mode<synchronous>, transform_indices = @transform_3, window_bounds = array<i64: 1, 1, 96>}, {pipeline_mode = #tpu.pipeline_mode<synchronous>, transform_indices = @transform_4, window_bounds = array<i64: 2, 32, 96>}, {pipeline_mode = #tpu.pipeline_mode<synchronous>, transform_indices = @transform_5, window_bounds = array<i64: 2, 1, 96>}, {pipeline_mode = #tpu.pipeline_mode<synchronous>, transform_indices = @transform_6, window_bounds = array<i64: 32, 32>}, {pipeline_mode = #tpu.pipeline_mode<synchronous>, transform_indices = @transform_7, window_bounds = array<i64: 2, 32, 32>}, {pipeline_mode = #tpu.pipeline_mode<synchronous>, transform_indices = @transform_8, window_bounds = array<i64: 2, 8, 32>}, {transform_indices = @transform_9, window_bounds = array<i64: 1, 2, 32>}, {pipeline_mode = #tpu.pipeline_mode<synchronous>, transform_indices = @transform_10, window_bounds = array<i64: 2, 2, 32>}]} {
    %c0_i32 = arith.constant 0 : i32
    %0 = arith.cmpi eq, %arg0, %c0_i32 : i32
    %1 = arith.extui %0 : i1 to i32
    %c0_i32_0 = arith.constant 0 : i32
    %2 = arith.cmpi ne, %1, %c0_i32_0 : i32
    scf.if %2 {
      %c0_62 = arith.constant 0 : index
      %c0_63 = arith.constant 0 : index
      %c0_64 = arith.constant 0 : index
      %119 = vector.load %arg2[%c0_62, %c0_63, %c0_64] : memref<2x2x32xf32, #tpu.memory_space<vmem>>, vector<2x2x32xf32>
      %c0_65 = arith.constant 0 : index
      %c0_66 = arith.constant 0 : index
      %c0_67 = arith.constant 0 : index
      %120 = vector.load %arg12[%c0_65, %c0_66, %c0_67] : memref<2x2x32xf32, #tpu.memory_space<vmem>>, vector<2x2x32xf32>
      tpu.vector_store %arg12[%c0_65, %c0_66, %c0_67], %119 {strides = array<i32>} : memref<2x2x32xf32, #tpu.memory_space<vmem>>, vector<2x2x32xf32>,
    } else {
    }
    %c0 = arith.constant 0 : index
    %c0_1 = arith.constant 0 : index
    %c0_2 = arith.constant 0 : index
    %3 = vector.load %arg1[%c0, %c0_1, %c0_2] : memref<1x2x96xf32, #tpu.memory_space<vmem>>, vector<1x2x96xf32>
    %4 = vector.shape_cast %3 : vector<1x2x96xf32> to vector<2x96xf32>
    %c0_3 = arith.constant 0 : index
    %c0_4 = arith.constant 0 : index
    %c0_5 = arith.constant 0 : index
    %5 = vector.load %arg12[%c0_3, %c0_4, %c0_5] : memref<2x2x32xf32, #tpu.memory_space<vmem>>, vector<1x2x32xf32>
    %6 = vector.shape_cast %5 : vector<1x2x32xf32> to vector<2x32xf32>
    %c0_6 = arith.constant 0 : index
    %c0_7 = arith.constant 0 : index
    %c0_8 = arith.constant 0 : index
    %7 = vector.load %arg5[%c0_6, %c0_7, %c0_8] : memref<2x32x96xf32, #tpu.memory_space<vmem>>, vector<1x32x96xf32>
    %8 = vector.shape_cast %7 : vector<1x32x96xf32> to vector<32x96xf32>
    %c0_9 = arith.constant 0 : index
    %c0_10 = arith.constant 0 : index
    %c0_11 = arith.constant 0 : index
    %9 = vector.load %arg6[%c0_9, %c0_10, %c0_11] : memref<2x1x96xf32, #tpu.memory_space<vmem>>, vector<1x1x96xf32>
    %10 = vector.shape_cast %9 : vector<1x1x96xf32> to vector<1x96xf32>
    %cst = arith.constant dense<0.000000e+00> : vector<2x96xf32>
    %11 = tpu.matmul %6, %8, %cst {dimension_numbers = #tpu.dot_dimension_numbers<[1], [0], [0], [1], [0, 0, 1, 1], [], []>} : vector<2x32xf32>, vector<32x96xf32>, vector<2x96xf32> -> vector<2x96xf32>
    %12 = vector.broadcast %10 : vector<1x96xf32> to vector<2x96xf32>
    %13 = arith.addf %11, %12 : vector<2x96xf32>
    %14 = vector.extract_strided_slice %4 {offsets = [0, 0], sizes = [2, 32], strides = [1, 1]} : vector<2x96xf32> to vector<2x32xf32>
    %15 = vector.extract_strided_slice %13 {offsets = [0, 0], sizes = [2, 32], strides = [1, 1]} : vector<2x96xf32> to vector<2x32xf32>
    %16 = arith.addf %14, %15 : vector<2x32xf32>
    %17 = arith.negf %16 : vector<2x32xf32>
    %18 = math.exp %17 : vector<2x32xf32>
    %cst_12 = arith.constant 1.000000e+00 : f32
    %19 = vector.broadcast %cst_12 : f32 to vector<2x32xf32>
    %20 = arith.addf %19, %18 : vector<2x32xf32>
    %21 = arith.divf %19, %20 : vector<2x32xf32>
    %22 = vector.extract_strided_slice %4 {offsets = [0, 32], sizes = [2, 32], strides = [1, 1]} : vector<2x96xf32> to vector<2x32xf32>
    %23 = vector.extract_strided_slice %13 {offsets = [0, 32], sizes = [2, 32], strides = [1, 1]} : vector<2x96xf32> to vector<2x32xf32>
    %24 = arith.addf %22, %23 : vector<2x32xf32>
    %25 = arith.negf %24 : vector<2x32xf32>
    %26 = math.exp %25 : vector<2x32xf32>
    %cst_13 = arith.constant 1.000000e+00 : f32
    %27 = vector.broadcast %cst_13 : f32 to vector<2x32xf32>
    %28 = arith.addf %27, %26 : vector<2x32xf32>
    %29 = arith.divf %27, %28 : vector<2x32xf32>
    %30 = vector.extract_strided_slice %4 {offsets = [0, 64], sizes = [2, 32], strides = [1, 1]} : vector<2x96xf32> to vector<2x32xf32>
    %31 = vector.extract_strided_slice %13 {offsets = [0, 64], sizes = [2, 32], strides = [1, 1]} : vector<2x96xf32> to vector<2x32xf32>
    %32 = arith.mulf %21, %31 : vector<2x32xf32>
    %33 = arith.addf %30, %32 : vector<2x32xf32>
    %34 = math.tanh %33 : vector<2x32xf32>
    %cst_14 = arith.constant 1.000000e+00 : f32
    %35 = vector.broadcast %cst_14 : f32 to vector<2x32xf32>
    %36 = arith.subf %35, %29 : vector<2x32xf32>
    %37 = arith.mulf %36, %34 : vector<2x32xf32>
    %38 = arith.mulf %29, %6 : vector<2x32xf32>
    %39 = arith.addf %37, %38 : vector<2x32xf32>
    %c0_15 = arith.constant 0 : index
    %c0_16 = arith.constant 0 : index
    %c0_17 = arith.constant 0 : index
    %40 = vector.load %arg12[%c0_15, %c0_16, %c0_17] : memref<2x2x32xf32, #tpu.memory_space<vmem>>, vector<1x2x32xf32>
    %41 = vector.shape_cast %40 : vector<1x2x32xf32> to vector<2x32xf32>
    %42 = vector.shape_cast %39 : vector<2x32xf32> to vector<1x2x32xf32>
    tpu.vector_store %arg12[%c0_15, %c0_16, %c0_17], %42 {strides = array<i32>} : memref<2x2x32xf32, #tpu.memory_space<vmem>>, vector<1x2x32xf32>,
    %c0_18 = arith.constant 0 : index
    %c0_19 = arith.constant 0 : index
    %c0_20 = arith.constant 0 : index
    %43 = vector.load %arg3[%c0_18, %c0_19, %c0_20] : memref<1x32x96xf32, #tpu.memory_space<vmem>>, vector<1x32x96xf32>
    %44 = vector.shape_cast %43 : vector<1x32x96xf32> to vector<32x96xf32>
    %cst_21 = arith.constant dense<0.000000e+00> : vector<2x96xf32>
    %45 = tpu.matmul %39, %44, %cst_21 {dimension_numbers = #tpu.dot_dimension_numbers<[1], [0], [0], [1], [0, 0, 1, 1], [], []>} : vector<2x32xf32>, vector<32x96xf32>, vector<2x96xf32> -> vector<2x96xf32>
    %c0_22 = arith.constant 0 : index
    %c0_23 = arith.constant 0 : index
    %c0_24 = arith.constant 0 : index
    %46 = vector.load %arg4[%c0_22, %c0_23, %c0_24] : memref<1x1x96xf32, #tpu.memory_space<vmem>>, vector<1x1x96xf32>
    %47 = vector.shape_cast %46 : vector<1x1x96xf32> to vector<1x96xf32>
    %48 = vector.broadcast %47 : vector<1x96xf32> to vector<2x96xf32>
    %49 = arith.addf %45, %48 : vector<2x96xf32>
    %c1 = arith.constant 1 : index
    %c0_25 = arith.constant 0 : index
    %c0_26 = arith.constant 0 : index
    %50 = vector.load %arg12[%c1, %c0_25, %c0_26] : memref<2x2x32xf32, #tpu.memory_space<vmem>>, vector<1x2x32xf32>
    %51 = vector.shape_cast %50 : vector<1x2x32xf32> to vector<2x32xf32>
    %c1_27 = arith.constant 1 : index
    %c0_28 = arith.constant 0 : index
    %c0_29 = arith.constant 0 : index
    %52 = vector.load %arg5[%c1_27, %c0_28, %c0_29] : memref<2x32x96xf32, #tpu.memory_space<vmem>>, vector<1x32x96xf32>
    %53 = vector.shape_cast %52 : vector<1x32x96xf32> to vector<32x96xf32>
    %c1_30 = arith.constant 1 : index
    %c0_31 = arith.constant 0 : index
    %c0_32 = arith.constant 0 : index
    %54 = vector.load %arg6[%c1_30, %c0_31, %c0_32] : memref<2x1x96xf32, #tpu.memory_space<vmem>>, vector<1x1x96xf32>
    %55 = vector.shape_cast %54 : vector<1x1x96xf32> to vector<1x96xf32>
    %cst_33 = arith.constant dense<0.000000e+00> : vector<2x96xf32>
    %56 = tpu.matmul %51, %53, %cst_33 {dimension_numbers = #tpu.dot_dimension_numbers<[1], [0], [0], [1], [0, 0, 1, 1], [], []>} : vector<2x32xf32>, vector<32x96xf32>, vector<2x96xf32> -> vector<2x96xf32>
    %57 = vector.broadcast %55 : vector<1x96xf32> to vector<2x96xf32>
    %58 = arith.addf %56, %57 : vector<2x96xf32>
    %59 = vector.extract_strided_slice %49 {offsets = [0, 0], sizes = [2, 32], strides = [1, 1]} : vector<2x96xf32> to vector<2x32xf32>
    %60 = vector.extract_strided_slice %58 {offsets = [0, 0], sizes = [2, 32], strides = [1, 1]} : vector<2x96xf32> to vector<2x32xf32>
    %61 = arith.addf %59, %60 : vector<2x32xf32>
    %62 = arith.negf %61 : vector<2x32xf32>
    %63 = math.exp %62 : vector<2x32xf32>
    %cst_34 = arith.constant 1.000000e+00 : f32
    %64 = vector.broadcast %cst_34 : f32 to vector<2x32xf32>
    %65 = arith.addf %64, %63 : vector<2x32xf32>
    %66 = arith.divf %64, %65 : vector<2x32xf32>
    %67 = vector.extract_strided_slice %49 {offsets = [0, 32], sizes = [2, 32], strides = [1, 1]} : vector<2x96xf32> to vector<2x32xf32>
    %68 = vector.extract_strided_slice %58 {offsets = [0, 32], sizes = [2, 32], strides = [1, 1]} : vector<2x96xf32> to vector<2x32xf32>
    %69 = arith.addf %67, %68 : vector<2x32xf32>
    %70 = arith.negf %69 : vector<2x32xf32>
    %71 = math.exp %70 : vector<2x32xf32>
    %cst_35 = arith.constant 1.000000e+00 : f32
    %72 = vector.broadcast %cst_35 : f32 to vector<2x32xf32>
    %73 = arith.addf %72, %71 : vector<2x32xf32>
    %74 = arith.divf %72, %73 : vector<2x32xf32>
    %75 = vector.extract_strided_slice %49 {offsets = [0, 64], sizes = [2, 32], strides = [1, 1]} : vector<2x96xf32> to vector<2x32xf32>
    %76 = vector.extract_strided_slice %58 {offsets = [0, 64], sizes = [2, 32], strides = [1, 1]} : vector<2x96xf32> to vector<2x32xf32>
    %77 = arith.mulf %66, %76 : vector<2x32xf32>
    %78 = arith.addf %75, %77 : vector<2x32xf32>
    %79 = math.tanh %78 : vector<2x32xf32>
    %cst_36 = arith.constant 1.000000e+00 : f32
    %80 = vector.broadcast %cst_36 : f32 to vector<2x32xf32>
    %81 = arith.subf %80, %74 : vector<2x32xf32>
    %82 = arith.mulf %81, %79 : vector<2x32xf32>
    %83 = arith.mulf %74, %51 : vector<2x32xf32>
    %84 = arith.addf %82, %83 : vector<2x32xf32>
    %c1_37 = arith.constant 1 : index
    %c0_38 = arith.constant 0 : index
    %c0_39 = arith.constant 0 : index
    %85 = vector.load %arg12[%c1_37, %c0_38, %c0_39] : memref<2x2x32xf32, #tpu.memory_space<vmem>>, vector<1x2x32xf32>
    %86 = vector.shape_cast %85 : vector<1x2x32xf32> to vector<2x32xf32>
    %87 = vector.shape_cast %84 : vector<2x32xf32> to vector<1x2x32xf32>
    tpu.vector_store %arg12[%c1_37, %c0_38, %c0_39], %87 {strides = array<i32>} : memref<2x2x32xf32, #tpu.memory_space<vmem>>, vector<1x2x32xf32>,
    %c0_40 = arith.constant 0 : index
    %c0_41 = arith.constant 0 : index
    %c0_42 = arith.constant 0 : index
    %88 = vector.load %arg9[%c0_40, %c0_41, %c0_42] : memref<2x8x32xf32, #tpu.memory_space<vmem>>, vector<2x8x32xf32>
    %c0_43 = arith.constant 0 : index
    %c0_44 = arith.constant 0 : index
    %89 = vector.load %arg7[%c0_43, %c0_44] : memref<32x32xf32, #tpu.memory_space<vmem>>, vector<32x32xf32>
    %cst_45 = arith.constant dense<0.000000e+00> : vector<2x32xf32>
    %90 = tpu.matmul %84, %89, %cst_45 {dimension_numbers = #tpu.dot_dimension_numbers<[1], [0], [0], [1], [0, 0, 1, 1], [], []>} : vector<2x32xf32>, vector<32x32xf32>, vector<2x32xf32> -> vector<2x32xf32>
    %91 = vector.shape_cast %90 : vector<2x32xf32> to vector<2x1x32xf32>
    "tpu.trace_start"() <{level = 10 : i32, message = "bqh,bsh->bqs"}> : () -> ()
    %cst_46 = arith.constant dense<0.000000e+00> : vector<2x1x8xf32>
    %92 = tpu.matmul %91, %88, %cst_46 {dimension_numbers = #tpu.dot_dimension_numbers<[2], [2], [1], [1], [0, 0, 0, 1, 1, 1], [0], [0]>} : vector<2x1x32xf32>, vector<2x8x32xf32>, vector<2x1x8xf32> -> vector<2x1x8xf32>
    "tpu.trace_stop"() : () -> ()
    %cst_47 = arith.constant dense<0xFF800000> : vector<2x1xf32>
    %93 = vector.multi_reduction <maximumf>, %92, %cst_47 [2] : vector<2x1x8xf32> to vector<2x1xf32>
    %94 = vector.shape_cast %93 : vector<2x1xf32> to vector<2x1x1xf32>
    %95 = vector.broadcast %94 : vector<2x1x1xf32> to vector<2x1x8xf32>
    %96 = arith.subf %92, %95 : vector<2x1x8xf32>
    %97 = math.exp %96 : vector<2x1x8xf32>
    %cst_48 = arith.constant dense<0.000000e+00> : vector<2x1xf32>
    %98 = vector.multi_reduction <add>, %97, %cst_48 [2] : vector<2x1x8xf32> to vector<2x1xf32>
    %99 = vector.shape_cast %98 : vector<2x1xf32> to vector<2x1x1xf32>
    %100 = tpu.reciprocal %99 {approx = true} : vector<2x1x1xf32> -> vector<2x1x1xf32>
    %101 = vector.broadcast %100 : vector<2x1x1xf32> to vector<2x1x8xf32>
    %102 = arith.mulf %97, %101 : vector<2x1x8xf32>
    "tpu.trace_start"() <{level = 10 : i32, message = "bqs,bsh->bqh"}> : () -> ()
    %cst_49 = arith.constant dense<0.000000e+00> : vector<2x1x32xf32>
    %103 = tpu.matmul %102, %88, %cst_49 {dimension_numbers = #tpu.dot_dimension_numbers<[2], [1], [1], [2], [0, 0, 0, 1, 1, 2], [0], [0]>} : vector<2x1x8xf32>, vector<2x8x32xf32>, vector<2x1x32xf32> -> vector<2x1x32xf32>
    "tpu.trace_stop"() : () -> ()
    %104 = vector.shape_cast %103 : vector<2x1x32xf32> to vector<2x32xf32>
    %c0_50 = arith.constant 0 : index
    %c0_51 = arith.constant 0 : index
    %c0_52 = arith.constant 0 : index
    %105 = vector.load %arg8[%c0_50, %c0_51, %c0_52] : memref<2x32x32xf32, #tpu.memory_space<vmem>>, vector<1x32x32xf32>
    %106 = vector.shape_cast %105 : vector<1x32x32xf32> to vector<32x32xf32>
    %cst_53 = arith.constant dense<0.000000e+00> : vector<2x32xf32>
    %107 = tpu.matmul %104, %106, %cst_53 {dimension_numbers = #tpu.dot_dimension_numbers<[1], [0], [0], [1], [0, 0, 1, 1], [], []>} : vector<2x32xf32>, vector<32x32xf32>, vector<2x32xf32> -> vector<2x32xf32>
    %c1_54 = arith.constant 1 : index
    %c0_55 = arith.constant 0 : index
    %c0_56 = arith.constant 0 : index
    %108 = vector.load %arg8[%c1_54, %c0_55, %c0_56] : memref<2x32x32xf32, #tpu.memory_space<vmem>>, vector<1x32x32xf32>
    %109 = vector.shape_cast %108 : vector<1x32x32xf32> to vector<32x32xf32>
    %cst_57 = arith.constant dense<0.000000e+00> : vector<2x32xf32>
    %110 = tpu.matmul %84, %109, %cst_57 {dimension_numbers = #tpu.dot_dimension_numbers<[1], [0], [0], [1], [0, 0, 1, 1], [], []>} : vector<2x32xf32>, vector<32x32xf32>, vector<2x32xf32> -> vector<2x32xf32>
    %111 = arith.addf %107, %110 : vector<2x32xf32>
    %112 = math.tanh %111 : vector<2x32xf32>
    %c0_58 = arith.constant 0 : index
    %c0_59 = arith.constant 0 : index
    %c0_60 = arith.constant 0 : index
    %113 = vector.load %arg10[%c0_58, %c0_59, %c0_60] : memref<1x2x32xf32, #tpu.memory_space<vmem>>, vector<1x2x32xf32>
    %114 = vector.shape_cast %113 : vector<1x2x32xf32> to vector<2x32xf32>
    %115 = vector.shape_cast %112 : vector<2x32xf32> to vector<1x2x32xf32>
    tpu.vector_store %arg10[%c0_58, %c0_59, %c0_60], %115 {strides = array<i32>} : memref<1x2x32xf32, #tpu.memory_space<vmem>>, vector<1x2x32xf32>,
    %c4_i32 = arith.constant 4 : i32
    %116 = arith.cmpi eq, %arg0, %c4_i32 : i32
    %117 = arith.extui %116 : i1 to i32
    %c0_i32_61 = arith.constant 0 : i32
    %118 = arith.cmpi ne, %117, %c0_i32_61 : i32
    scf.if %118 {
      %c0_62 = arith.constant 0 : index
      %c0_63 = arith.constant 0 : index
      %c0_64 = arith.constant 0 : index
      %119 = vector.load %arg12[%c0_62, %c0_63, %c0_64] : memref<2x2x32xf32, #tpu.memory_space<vmem>>, vector<2x2x32xf32>
      %c0_65 = arith.constant 0 : index
      %c0_66 = arith.constant 0 : index
      %c0_67 = arith.constant 0 : index
      %120 = vector.load %arg11[%c0_65, %c0_66, %c0_67] : memref<2x2x32xf32, #tpu.memory_space<vmem>>, vector<2x2x32xf32>
      tpu.vector_store %arg11[%c0_65, %c0_66, %c0_67], %119 {strides = array<i32>} : memref<2x2x32xf32, #tpu.memory_space<vmem>>, vector<2x2x32xf32>,
    } else {
    }
    return
  }
  func.func @transform_0(%arg0: i32) -> (i32, i32, i32) {
    %c0_i32 = arith.constant 0 : i32
    %c0_i32_0 = arith.constant 0 : i32
    %c0_i32_1 = arith.constant 0 : i32
    return %arg0, %c0_i32, %c0_i32_0 : i32, i32, i32
  }
  func.func @transform_1(%arg0: i32) -> (i32, i32, i32) {
    %c0_i32 = arith.constant 0 : i32
    %c0_i32_0 = arith.constant 0 : i32
    %c0_i32_1 = arith.constant 0 : i32
    %c0_i32_2 = arith.constant 0 : i32
    return %c0_i32, %c0_i32_0, %c0_i32_1 : i32, i32, i32
  }
  func.func @transform_2(%arg0: i32) -> (i32, i32, i32) {
    %c0_i32 = arith.constant 0 : i32
    %c0_i32_0 = arith.constant 0 : i32
    %c0_i32_1 = arith.constant 0 : i32
    %c0_i32_2 = arith.constant 0 : i32
    return %c0_i32, %c0_i32_0, %c0_i32_1 : i32, i32, i32
  }
  func.func @transform_3(%arg0: i32) -> (i32, i32, i32) {
    %c0_i32 = arith.constant 0 : i32
    %c0_i32_0 = arith.constant 0 : i32
    %c0_i32_1 = arith.constant 0 : i32
    %c0_i32_2 = arith.constant 0 : i32
    return %c0_i32, %c0_i32_0, %c0_i32_1 : i32, i32, i32
  }
  func.func @transform_4(%arg0: i32) -> (i32, i32, i32) {
    %c0_i32 = arith.constant 0 : i32
    %c0_i32_0 = arith.constant 0 : i32
    %c0_i32_1 = arith.constant 0 : i32
    %c0_i32_2 = arith.constant 0 : i32
    return %c0_i32, %c0_i32_0, %c0_i32_1 : i32, i32, i32
  }
  func.func @transform_5(%arg0: i32) -> (i32, i32, i32) {
    %c0_i32 = arith.constant 0 : i32
    %c0_i32_0 = arith.constant 0 : i32
    %c0_i32_1 = arith.constant 0 : i32
    %c0_i32_2 = arith.constant 0 : i32
    return %c0_i32, %c0_i32_0, %c0_i32_1 : i32, i32, i32
  }
  func.func @transform_6(%arg0: i32) -> (i32, i32) {
    %c0_i32 = arith.constant 0 : i32
    %c0_i32_0 = arith.constant 0 : i32
    %c0_i32_1 = arith.constant 0 : i32
    return %c0_i32, %c0_i32_0 : i32, i32
  }
  func.func @transform_7(%arg0: i32) -> (i32, i32, i32) {
    %c0_i32 = arith.constant 0 : i32
    %c0_i32_0 = arith.constant 0 : i32
    %c0_i32_1 = arith.constant 0 : i32
    %c0_i32_2 = arith.constant 0 : i32
    return %c0_i32, %c0_i32_0, %c0_i32_1 : i32, i32, i32
  }
  func.func @transform_8(%arg0: i32) -> (i32, i32, i32) {
    %c0_i32 = arith.constant 0 : i32
    %c0_i32_0 = arith.constant 0 : i32
    %c0_i32_1 = arith.constant 0 : i32
    %c0_i32_2 = arith.constant 0 : i32
    return %c0_i32, %c0_i32_0, %c0_i32_1 : i32, i32, i32
  }
  func.func @transform_9(%arg0: i32) -> (i32, i32, i32) {
    %c0_i32 = arith.constant 0 : i32
    %c0_i32_0 = arith.constant 0 : i32
    %c0_i32_1 = arith.constant 0 : i32
    return %arg0, %c0_i32, %c0_i32_0 : i32, i32, i32
  }
  func.func @transform_10(%arg0: i32) -> (i32, i32, i32) {
    %c0_i32 = arith.constant 0 : i32
    %c0_i32_0 = arith.constant 0 : i32
    %c0_i32_1 = arith.constant 0 : i32
    %c0_i32_2 = arith.constant 0 : i32
    return %c0_i32, %c0_i32_0, %c0_i32_1 : i32, i32, i32
  }
}

</mosaic_0001>

<bundles_post_ra>
// kernel: forward.6
= control target key start
LH: loop header
LB: loop body
LE: loop exit
PB: predicated region body
PF: predicated region fallthrough
CT: control target
= control target key end

     0   :  { %vm22_vm0 = vcmask 130048   ;;  %vm52_vm1 = vcmask 785408   ;;  %s105_s1 = inlined_call_operand.vmem [shape: f32[16,96], index: 1, kind: input, shape index: {}]   ;;  %s106_s0 = inlined_call_operand.vmem [shape: f32[16,16], index: 0, kind: input, shape index: {}]   ;;  %s107_s2 = inlined_call_operand.vmem [shape: f32[1,96], index: 2, kind: input, shape index: {}]   ;;  %s108_s3 = inlined_call_operand.vmem [shape: f32[16,96], index: 3, kind: output, shape index: {}]  }
   0x1   :  { %v17_v0 = vld [vmem:[%s105_s1 + $0x8] sm:$0xff]  ;;  %v16_v1 = vld [vmem:[%s105_s1] sm:$0xff] }
   0x2   :  { %43 = vmatpush.msra.mxu0 %v17_v0  ;;  %61 = vmatpush.msra.mxu1 %v17_v0  ;;  %v14_v2 = vld [vmem:[%s106_s0] sm:$0xff]  ;;  %v15_v3 = vld [vmem:[%s106_s0 + $0x8] sm:$0xff] }
   0x3   :  { %v63_v4 = vld [vmem:[%s107_s2] ss:$0 sm:$0xff] }
   0x4   :  { %44 = vmatpush.msra.mxu0 %v16_v1  ;;  %62 = vmatpush.msra.mxu1 %v16_v1 }
   0x5   :  { %59 = vmatmul.msk.f32.vlgmr.msra.gmra.mxu0 %vm22_vm0, %v14_v2  ;;  %60 = vmatmul.msk.f32.vlgmr.msra.gmra.mxu1 %vm22_vm0, %v15_v3 }
  0x82   :  { %v46_v5 = vpop.f32.mrf.mxu0  ;;  %v49_v6 = vpop.f32.mrf.mxu1 }
  0x83   :  { %v47_v7 = vadd.f32 %v63_v4, %v46_v5  ;;  %v50_v8 = vadd.f32 %v63_v4, %v49_v6 }
  0x85   :  { %53 = vst.msk [vmem:[%s108_s3] sm:$0xff] %vm52_vm1, %v47_v7 }
  0x86   :  { %54 = vst.msk [vmem:[%s108_s3 + $0x8] sm:$0xff] %vm52_vm1, %v50_v8 }

// kernel: forward.8
= control target key start
LH: loop header
LB: loop body
LE: loop exit
PB: predicated region body
PF: predicated region fallthrough
CT: control target
= control target key end

     0   :  { %vm24_vm0 = vcmask 261120   ;;  %vm54_vm1 = vcmask 785408   ;;  %s115_s1 = inlined_call_operand.vmem [shape: f32[32,96], index: 1, kind: input, shape index: {}]   ;;  %s116_s2 = inlined_call_operand.vmem [shape: f32[1,96], index: 2, kind: input, shape index: {}]   ;;  %s117_s0 = inlined_call_operand.vmem [shape: f32[16,32], index: 0, kind: input, shape index: {}]   ;;  %s118_s3 = inlined_call_operand.vmem [shape: f32[16,96], index: 3, kind: output, shape index: {}]  }
   0x1   :  { %v19_v0 = vld [vmem:[%s115_s1 + $0x18] sm:$0xff]  ;;  %v18_v1 = vld [vmem:[%s115_s1 + $0x10] sm:$0xff]  ;;  %v17_v2 = vld [vmem:[%s115_s1 + $0x8] sm:$0xff] }
   0x2   :  { %43 = vmatpush.msra.mxu0 %v19_v0  ;;  %63 = vmatpush.msra.mxu1 %v19_v0  ;;  %v16_v3 = vld [vmem:[%s115_s1] sm:$0xff]  ;;  %v15_v5 = vld [vmem:[%s117_s0 + $0x8] sm:$0xff] }
   0x3   :  { %v14_v4 = vld [vmem:[%s117_s0] sm:$0xff] }
   0x4   :  { %44 = vmatpush.msra.mxu0 %v18_v1  ;;  %64 = vmatpush.msra.mxu1 %v18_v1  ;;  %v67_v6 = vld [vmem:[%s116_s2] ss:$0 sm:$0xff] }
   0x6   :  { %45 = vmatpush.msra.mxu0 %v17_v2  ;;  %65 = vmatpush.msra.mxu1 %v17_v2 }
   0x8   :  { %46 = vmatpush.msra.mxu0 %v16_v3  ;;  %66 = vmatpush.msra.mxu1 %v16_v3 }
   0x9   :  { %61 = vmatmul.msk.f32.vlgmr.msra.gmra.mxu0 %vm24_vm0, %v14_v4  ;;  %62 = vmatmul.msk.f32.vlgmr.msra.gmra.mxu1 %vm24_vm0, %v15_v5 }
  0x86   :  { %v48_v7 = vpop.f32.mrf.mxu0  ;;  %v51_v8 = vpop.f32.mrf.mxu1 }
  0x87   :  { %v49_v9 = vadd.f32 %v67_v6, %v48_v7  ;;  %v52_v10 = vadd.f32 %v67_v6, %v51_v8 }
  0x89   :  { %55 = vst.msk [vmem:[%s118_s3] sm:$0xff] %vm54_vm1, %v49_v9 }
  0x8a   :  { %56 = vst.msk [vmem:[%s118_s3 + $0x8] sm:$0xff] %vm54_vm1, %v52_v10 }

// kernel: forward.10
= control target key start
LH: loop header
LB: loop body
LE: loop exit
PB: predicated region body
PF: predicated region fallthrough
CT: control target
= control target key end

     0   :  { %vm22_vm0 = vcmask 130048   ;;  %vm52_vm1 = vcmask 785408   ;;  %vm54_vm2 = vcmask 779264   ;;  %s106_s1 = inlined_call_operand.vmem [shape: f32[16,96], index: 1, kind: input, shape index: {}]   ;;  %s107_s0 = inlined_call_operand.vmem [shape: f32[10,16], index: 0, kind: input, shape index: {}]   ;;  %s108_s2 = inlined_call_operand.vmem [shape: f32[1,96], index: 2, kind: input, shape index: {}]   ;;  %s109_s3 = inlined_call_operand.vmem [shape: f32[10,96], index: 3, kind: output, shape index: {}]  }
   0x1   :  { %v17_v0 = vld [vmem:[%s106_s1 + $0x8] sm:$0xff]  ;;  %v16_v1 = vld [vmem:[%s106_s1] sm:$0xff] }
   0x2   :  { %43 = vmatpush.msra.mxu0 %v17_v0  ;;  %62 = vmatpush.msra.mxu1 %v17_v0  ;;  %v14_v2 = vld [vmem:[%s107_s0] sm:$0xff]  ;;  %v15_v3 = vld [vmem:[%s107_s0 + $0x8] sm:$0x3] }
   0x3   :  { %v64_v4 = vld [vmem:[%s108_s2] ss:$0 sm:$0xff] }
   0x4   :  { %44 = vmatpush.msra.mxu0 %v16_v1  ;;  %63 = vmatpush.msra.mxu1 %v16_v1 }
   0x5   :  { %60 = vmatmul.msk.f32.vlgmr.msra.gmra.mxu0 %vm22_vm0, %v14_v2  ;;  %61 = vmatmul.msk.f32.vlgmr.msra.gmra.mxu1 %vm22_vm0, %v15_v3 }
  0x82   :  { %v46_v5 = vpop.f32.mrf.mxu0  ;;  %v49_v6 = vpop.f32.mrf.mxu1 }
  0x83   :  { %v47_v7 = vadd.f32 %v64_v4, %v46_v5  ;;  %v50_v8 = vadd.f32 %v64_v4, %v49_v6 }
  0x85   :  { %53 = vst.msk [vmem:[%s109_s3] sm:$0xff] %vm52_vm1, %v47_v7 }
  0x86   :  { %55 = vst.msk [vmem:[%s109_s3 + $0x8] sm:$0x3] %vm54_vm2, %v50_v8 }

// kernel: forward.7
= control target key start
LH: loop header
LB: loop body
LE: loop exit
PB: predicated region body
PF: predicated region fallthrough
CT: control target
= control target key end

     0   :  { %s848_s18 = smov 0   ;;  %s850_s19 = smov 0   ;;  %s931_s0 = inlined_call_operand.vmem [shape: f32[2,8,2,48], index: 0, kind: input, shape index: {}]   ;;  %s932_s1 = inlined_call_operand.vmem [shape: f32[2,16,48], index: 1, kind: input, shape index: {}]   ;;  %s933_s2 = inlined_call_operand.vmem [shape: f32[2,1,48], index: 2, kind: input, shape index: {}]   ;;  %s934_s3 = inlined_call_operand.vmem [shape: f32[8,2,1], index: 3, kind: input, shape index: {}]   ;;  %s935_s4 = inlined_call_operand.vmem [shape: f32[2,8,2,16], index: 4, kind: output, shape index: {0}]   ;;  %s936_s5 = inlined_call_operand.vmem [shape: f32[2,2,16], index: 5, kind: output, shape index: {1}]  }
   0x1   :  { %937 = sst [smem:[#allocation5_spill]] %s933_s2  ;;  %s852_s20 = smov 0  }
   0x2   :  { %s854_s21 = smov 0   ;;  %s856_s22 = smov 0  }
   0x3 LB: > { %s25_s23 = sadd.s32 1, %s802_s20  ;;  %s28_s24 = sadd.s32 1, %s806_s21  ;;  %s810_s22 = sphi %s856_s22, %s16_s22   ;;  %s806_s21 = sphi %s854_s21, %s946_s21   ;;  %s802_s20 = sphi %s852_s20, %s945_s20   ;;  %s798_s19 = sphi %s850_s19, %s944_s19   ;;  %s794_s18 = sphi %s848_s18, %s943_s18  }
   0x4   : > { %p26_p0 = scmp.ge.s32.totalorder %s25_s23, 8  ;;  %p700_p1 = scmp.ge.s32.totalorder %s810_s22, 1 }
   0x5   : > { %p286_p2 = scmp.lt.s32.totalorder %s810_s22, 17 }
   0x6   : > { %s948_s23 = smov (%p26_p0, %s25_s23), 0  ;;  %s950_s24 = smov (!%p26_p0, %s28_s24), %s806_s21 }
   0x7   : > { %938 = sst [smem:[#allocation3_spill]] %s948_s23  ;;  %p287_p3 = pnand %p700_p1, %p286_p2 }
   0x8   : > { %p30_p4 = scmp.ge.s32.totalorder %s950_s24, 2  ;;  %s351_s25 = ssub.s32 (!%p287_p3), 7, %s794_s18 }
   0x9   : > { %290 = sbr.rel (%p287_p3) target bundleno = 652 (0x28c), region = 36  ;;  %s353_s26 = ssub.s32 (!%p287_p3), 1, %s798_s19 }
   0xa   : > { %s952_s24 = smov (%p30_p4, %s950_s24), 0  ;;  %s352_s27 = smul.u32 (!%p287_p3), %s798_s19, %s351_s25 }
   0xb   : > { %939 = sst [smem:[#allocation4_spill]] %s952_s24  ;;  %p356_p5 = scmp.lt.s32.totalorder (!%p287_p3), %s798_s19, 1 }
   0xc   : > { %s354_s28 = smul.u32 (!%p287_p3), %s794_s18, %s353_s26  ;;  %s940_s2 = sld [smem:[#allocation5_spill]] (!%p287_p3) }
   0xd   : > { %p709_p7 = scmp.ne.s32.totalorder (!%p287_p3), %s794_s18, 0 }
   0xe   : > { %s954_s19 = smov (!%p356_p5, %s798_s19), 1  ;;  %s355_s29 = sadd.s32 %s354_s28, %s352_s27 }
   0xf   : > { %p358_p6 = scmp.lt.s32.totalorder %s355_s29, 7  ;;  %s701_s30 = sshll.u32 %s954_s19, 3 }
  0x10   : > { %s715_s6 = sshll.u32 %s954_s19, 4  ;;  %s708_s13 = sshll.u32 %s954_s19, 1 }
  0x11   : > { %s956_s29 = smov (!%p358_p6, %s355_s29), 7  ;;  %s373_s12 = scalar_lea.vmem %s932_s1, %s715_s6 }
  0x12   : > { %s376_s9 = scalar_lea.vmem %s940_s2, %s954_s19  ;;  %s361_s14 = sadd.s32 %s701_s30, %s956_s29 }
  0x13   : > { %s705_s15 = sshll.u32 %s956_s29, 1  ;;  %s702_s16 = sshll.u32 %s361_s14, 1 }
  0x14   : > { %s385_s26 = scalar_lea.vmem %s934_s3, %s705_s15  ;;  %s363_s24 = scalar_lea.vmem %s931_s0, %s702_s16 }
  0x15   : > { %s903_s8 = scalar_lea.vmem %s935_s4, %s702_s16  ;;  %s908_s19 = scalar_lea.vmem %s936_s5, %s708_s13 }
  0x16   : > { %416 = sbr.rel (%p709_p7) target bundleno = 29 (0x1d), region = 40 }
  0x1b   : > { %vm417_vm0 = vcmask 123904   ;;  %v812_v0 = vmov 0.0  }
  0x1c   : > { %418 = vst.msk [vmem:[#allocation2] sm:$0x3] %vm417_vm0, %v812_v0 }
  0x1d PF: > { %v422_v1 = vld [vmem:[%s373_s12 + $0x8] sm:$0xff]  ;;  %v421_v2 = vld [vmem:[%s373_s12] sm:$0xff]  ;;  %vm427_vm1 = vcmask 130048   ;;  %s813_s23 = smov 16   ;;  %s814_s2 = smov 96   ;;  %v815_v13 = vmov 0  }
  0x1e   : > { %445 = vmatpush.msra.mxu0 %v422_v1  ;;  %v765_v4 = vld [vmem:[%s376_s9] ss:$0 sm:$0xff]  ;;  %762 = vset.pattern.permute.xlu1 %v815_v13  ;;  %s817_s29 = smov 112   ;;  %vm516_vm6 = vcmask 123904   ;;  %p712_p8 = scmp.ne.s32.totalorder %s794_s18, 7 }
  0x1f   : > { %v420_v7 = vld [vmem:[%s363_s24] sm:$0x3]  ;;  %763 = vset.pattern.permute.xlu2 %v815_v13  ;;  %764 = vset.pattern.permute.xlu0 %v815_v13  ;;  %s816_s24 = smov 32  }
  0x20   : > { %446 = vmatpush.msra.mxu0 %v421_v2  ;;  %v493_v12 = vld [vmem:[%s385_s26] sm:$0x3] }
  0x21   : > { %v500_v14 = vsub.f32 1.0, %v493_v12 }
  0x23   : > { %v419_v3 = vld [vmem:[#allocation2] sm:$0x3]  ;;  %503 = vperm.xlu1 %762, %v500_v14  }
  0x24   : > { %488 = vrot.lane.b32.xlu2 %v419_v3, %s813_s23  ;;  %710 = vmatmul.msk.f32.vlgmr.msra.gmra.mxu0 %vm427_vm1, %v419_v3 }
  0x2c   : > { %496 = vperm.xlu2 %763, %v493_v12  }
  0x7e   : > { %v489_v32 = vpop.permute.xlu2 %488 }
  0x86   : > { %v497_v37 = vpop.permute.xlu2 %496 }
  0x95   : > { %v504_v27 = vpop.permute.xlu1 %503 }
  0x96   : > { %v506_v28 = vmul.f32 %v504_v27, %v419_v3 }
  0xa1   : > { %v448_v5 = vpop.f32.mrf.mxu0 }
  0xa2   : > { %v449_v6 = vadd.f32 %v765_v4, %v448_v5 }
  0xa4   : > { %472 = vrot.lane.b32.xlu0 %v449_v6, %s814_s2  ;;  %v451_v8 = vadd.f32 %v449_v6, %v420_v7 }
  0xa6   : > { %v711_v9 = vmul.f32 -1.442695, %v451_v8 }
  0xa8   : > { %766 = vpow2.f32 %v711_v9 }
  0xae   : > { %v767_v10 = vpop.eup %766 }
  0xaf   : > { %v455_v11 = vadd.f32 1.0, %v767_v10 }
  0xb1   : > { %768 = vrcp.f32 %v455_v11  ;;  %v467_v20 = vand.u32 2147483648, %v455_v11  ;;  %vm461_vm3 = vweird.f32 %v455_v11  ;;  %v465_v21 = vand.u32 2147483647, %v455_v11 }
  0xb3   : > { %v468_v23 = vor.u32 1.1754944e-38, %v467_v20  ;;  %vm466_vm5 = vcmp.eq.f32.partialorder %v465_v21, 8.507059e+37 }
  0xb7   : > { %v769_v15 = vpop.eup %768 }
  0xb8   : > { %v457_v16 = vmul.f32 %v769_v15, %v455_v11  ;;  %vm462_vm2 = vweird.f32 %v769_v15 }
  0xb9   : > { %vm463_vm4 = vmor %vm461_vm3, %vm462_vm2 }
  0xba   : > { %v458_v17 = vsub.f32 1.0, %v457_v16 }
  0xbc   : > { %v459_v18 = vmul.f32 %v769_v15, %v458_v17 }
  0xbe   : > { %v460_v19 = vadd.f32 %v769_v15, %v459_v18 }
  0xc0   : > { %v464_v22 = vsel %vm463_vm4, %v769_v15, %v460_v19 }
  0xc1   : > { %v469_v24 = vsel %vm466_vm5, %v468_v23, %v464_v22 }
  0xc2   : > { %v482_v33 = vsub.f32 1.0, %v469_v24  ;;  %v491_v35 = vmul.f32 %v489_v32, %v469_v24 }
 0x116   : > { %v473_v25 = vpop.permute.xlu0 %472 }
 0x117   : > { %v475_v26 = vmul.f32 %v473_v25, %v469_v24 }
 0x119   : > { %477 = vrot.lane.b32.xlu0 %v475_v26, %s816_s24 }
 0x121   : > { %508 = vrot.lane.b32.xlu0 %v506_v28, %s813_s23 }
 0x18b   : > { %v478_v29 = vpop.permute.xlu0 %477 }
 0x18c   : > { %v480_v30 = vadd.f32 %v478_v29, %v420_v7 }
 0x18e   : > { %770 = vtanh.f32 %v480_v30 }
 0x193   : > { %v509_v39 = vpop.permute.xlu0 %508 }
 0x194   : > { %v771_v31 = vpop.eup %770 }
 0x195   : > { %484 = vrot.lane.b32.xlu1 %v771_v31, %s817_s29 }
 0x207   : > { %v485_v34 = vpop.permute.xlu1 %484 }
 0x208   : > { %v487_v36 = vmul.f32 %v485_v34, %v482_v33 }
 0x20a   : > { %v492_v38 = vadd.f32 %v491_v35, %v487_v36 }
 0x20c   : > { %v499_v40 = vmul.f32 %v497_v37, %v492_v38 }
 0x20e   : > { %v511_v41 = vadd.f32 %v509_v39, %v499_v40 }
 0x210   : > { %v518_v42 = vmul.f32 %v511_v41, %v497_v37  ;;  %513 = vrot.lane.b32.xlu1 %v511_v41, %s817_s29 }
 0x212   : > { %520 = vrot.lane.b32.xlu2 %v518_v42, %s817_s29 }
 0x26c   : > { %v521_v43 = vpop.permute.xlu2 %520 }
 0x26d   : > { %523 = vst.msk [vmem:[%s903_s8] sm:$0x3] %vm516_vm6, %v521_v43 }
 0x27f   : > { %527 = sbr.rel (%p712_p8) target bundleno = 652 (0x28c), region = 44 }
 0x282   : > { %v514_v44 = vpop.permute.xlu1 %513 }
 0x283   : > { %517 = vst.msk [vmem:[#allocation2] sm:$0x3] %vm516_vm6, %v514_v44 }
 0x28a   : > { %v528_v45 = vld [vmem:[#allocation2] sm:$0x3] }
 0x28b   : > { %529 = vst.msk [vmem:[%s908_s19] sm:$0x3] %vm516_vm6, %v528_v45 }
 0x28c PF: > { %s16_s22 = sadd.s32 1, %s810_s22   ;;  %s941_s30 = sld [smem:[#allocation3_spill]] }
 0x28d   : > { %p13_p9 = scmp.ge.s32.totalorder %s16_s22, 18   ;;  %s942_s6 = sld [smem:[#allocation4_spill]] }
 0x28e   : > { %s943_s18 = smov %s802_s20  ;;  %s944_s19 = smov %s806_s21 }
 0x28f   :  { %15 = sbr.rel (!%p13_p9) target bundleno = 3 (0x3), region = 95 }
 0x292   : > { %s945_s20 = smov %s941_s30 }
 0x293   : > { %s946_s21 = smov %s942_s6 }

// kernel: forward.11
= control target key start
LH: loop header
LB: loop body
LE: loop exit
PB: predicated region body
PF: predicated region fallthrough
CT: control target
= control target key end

     0   :  { %s1375_s0 = inlined_call_operand.vmem [shape: f32[5,2,96], index: 0, kind: input, shape index: {}]   ;;  %s1376_s1 = inlined_call_operand.vmem [shape: f32[2,2,32], index: 1, kind: input, shape index: {}]   ;;  %s1377_s2 = inlined_call_operand.vmem [shape: f32[1,32,96], index: 2, kind: input, shape index: {}]   ;;  %s1378_s3 = inlined_call_operand.vmem [shape: f32[1,1,96], index: 3, kind: input, shape index: {}]   ;;  %s1379_s4 = inlined_call_operand.vmem [shape: f32[2,32,96], index: 4, kind: input, shape index: {}]   ;;  %s1380_s5 = inlined_call_operand.vmem [shape: f32[2,1,96], index: 5, kind: input, shape index: {}]   ;;  %s1381_s6 = inlined_call_operand.vmem [shape: f32[32,32], index: 6, kind: input, shape index: {}]   ;;  %s1382_s7 = inlined_call_operand.vmem [shape: f32[2,32,32], index: 7, kind: input, shape index: {}]   ;;  %s1383_s8 = inlined_call_operand.vmem [shape: f32[2,8,32], index: 8, kind: input, shape index: {}]   ;;  %s1384_s9 = inlined_call_operand.hbm [shape: f32[5,2,32], index: 9, kind: output, shape index: {0}]   ;;  %s1385_s10 = inlined_call_operand.hbm [shape: f32[2,2,32], index: 10, kind: output, shape index: {1}]  }
   0x1   :  { %1390 = sst [smem:[#allocation10_spill]] %s1375_s0 }
   0x2   :  { %1391 = sst [smem:[#allocation11_spill]] %s1376_s1 }
   0x3   :  { %1392 = sst [smem:[#allocation12_spill]] %s1377_s2 }
   0x4   :  { %16 = vsyncpa [#allocation4], 0 }
   0x5   :  { %18 = vsyncpa [#allocation4 + $0x1], 0 }
   0x6   :  { %19 = vsyncpa [#allocation6], 0  ;;  %s1142_s13 = smov 0   ;;  %s1144_s14 = smov 0  }
   0x7   :  { %s1146_s15 = smov 0   ;;  %s1148_s16 = smov 0  }
   0x8 LB: > { %s1163_s17 = sadd.s32 4294967295, %s1080_s16   ;;  %s874_s18 = sadd.s32 4294967294, %s1080_s16   ;;  %s1080_s16 = sphi %s1148_s16, %s1409_s16   ;;  %s1076_s15 = sphi %s1146_s15, %s1408_s15   ;;  %s1072_s14 = sphi %s1144_s14, %s1407_s14   ;;  %s1068_s13 = sphi %s1142_s13, %s1406_s13  }
   0x9   : > { %s1167_s19 = sadd.s32 1, %s1080_s16   ;;  %s226_s20 = sadd.s32 1, %s1076_s15 }
   0xa   : > { %s223_s21 = ssub.s32 %s1080_s16, %s1167_s19  ;;  %p236_p0 = scmp.ne.s32.totalorder %s1076_s15, %s1072_s14 }
   0xb   : > { %p224_p1 = scmp.eq.s32.totalorder %s223_s21, 0  ;;  %p237_p2 = scmp.eq.s32.totalorder %s1163_s17, 4 }
   0xc   : > { %p242_p3 = scmp.ne.s32.totalorder %s1072_s14, %s1068_s13  ;;  %p243_p4 = scmp.eq.s32.totalorder %s874_s18, 4 }
   0xd   : > { %s1178_s22 = scalar_select %p224_p1, %s1076_s15, %s226_s20  }
   0xe   : > { %p1182_p5 = por %p237_p2, %p236_p0  ;;  %p1186_p6 = por %p243_p4, %p242_p3 }
   0xf   : > { %1393 = sst [smem:[#allocation9_spill]] %s1178_s22  ;;  %p877_p7 = scmp.ge.s32.totalorder %s1080_s16, 1 }
  0x10   : > { %p313_p8 = scmp.lt.s32.totalorder %s1080_s16, 6 }
  0x12   : > { %p314_p9 = pnand %p877_p7, %p313_p8 }
  0x13   : > { %s1386_s25 = sand.u32 (!%p314_p9), 1, %s1072_s14   ;;  %p350_p10 = scmp.lt.s32.totalorder (!%p314_p9), %s1163_s17, 4 }
  0x14   : > { %317 = sbr.rel (%p314_p9) target bundleno = 1957 (0x7a5), region = 56  ;;  %s1196_s26 = sshll.u32 (!%p314_p9), %s1386_s25, 1 }
  0x15   : > { %s1396_s0 = sld [smem:[#allocation10_spill]] (!%p314_p9)  ;;  %p880_p11 = scmp.ne.s32.totalorder (!%p314_p9), %s1163_s17, 0 }
  0x19   : > { %s351_s27 = scalar_select %p350_p10, %s1163_s17, 4 }
  0x1a   : > { %357 = sbr.rel (%p880_p11) target bundleno = 35 (0x23), region = 60  ;;  %s1397_s1 = sld [smem:[#allocation11_spill]] (!%p880_p11) }
  0x1b   : > { %s879_s28 = sshll.u32 %s351_s27, 1 }
  0x1c   : > { %s353_s11 = scalar_lea.vmem %s1396_s0, %s879_s28 }
  0x1f   : > { %vm360_vm0 = vcmask 254976  }
  0x20   : > { %v358_v0 = vld [vmem:[%s1397_s1] sm:$0x3]  ;;  %v359_v1 = vld [vmem:[%s1397_s1 + $0x2] sm:$0x3] }
  0x21   : > { %361 = vst.msk [vmem:[#allocation2] sm:$0x3] %vm360_vm0, %v358_v0 }
  0x22   : > { %362 = vst.msk [vmem:[#allocation2 + $0x2] sm:$0x3] %vm360_vm0, %v359_v1 }
  0x23 PF: > { %v368_v2 = vld [vmem:[%s1379_s4 + $0x18] sm:$0xff]  ;;  %v367_v3 = vld [vmem:[%s1379_s4 + $0x10] sm:$0xff]  ;;  %v366_v4 = vld [vmem:[%s1379_s4 + $0x8] sm:$0xff]  ;;  %vm373_vm1 = vcmask 261120   ;;  %s1387_s27 = smov 64   ;;  %s1389_s28 = smov 32  }
  0x24   : > { %389 = vmatpush.msra.mxu0 %v368_v2  ;;  %v365_v5 = vld [vmem:[%s1379_s4] sm:$0xff]  ;;  %v887_v30 = vld [vmem:[%s1379_s4 + $0x38] sm:$0xff]  ;;  %v886_v31 = vld [vmem:[%s1379_s4 + $0x30] sm:$0xff]  ;;  %s1398_s2 = sld [smem:[#allocation12_spill]]  ;;  %vm443_vm6 = vcmask 254976   ;;  %s1399_s25 = smov 64  }
  0x25   : > { %v961_v7 = vld [vmem:[%s1380_s5] ss:$0 sm:$0xff]  ;;  %502 = vmatpush.msra.mxu2 %v887_v30  ;;  %v885_v33 = vld [vmem:[%s1379_s4 + $0x28] sm:$0xff]  ;;  %v962_v46 = vld [vmem:[%s1380_s5 + $0x1] ss:$0 sm:$0xff]  ;;  %s1400_s21 = smov 32  }
  0x26   : > { %390 = vmatpush.msra.mxu0 %v367_v3  ;;  %v363_v10 = vld [vmem:[%s353_s11] sm:$0x3]  ;;  %s1083_s11 = smov 96   ;;  %vm637_vm11 = vcmask 57344   ;;  %vm660_vm12 = vcmask 64512   ;;  %vm739_vm13 = vcmask 1041409  }
  0x27   : > { %503 = vmatpush.msra.mxu2 %v886_v31  ;;  %v884_v36 = vld [vmem:[%s1379_s4 + $0x20] sm:$0xff]  ;;  %p904_p12 = scmp.ne.s32.totalorder %s1163_s17, 4 }
  0x28   : > { %391 = vmatpush.msra.mxu0 %v366_v4  ;;  %v364_v6 = vld [vmem:[#allocation2] sm:$0x3] }
  0x29   : > { %504 = vmatpush.msra.mxu2 %v885_v33  ;;  %v476_v37 = vld [vmem:[#allocation2 + $0x2] sm:$0x3]  ;;  %v963_v49 = vld [vmem:[%s1378_s3] ss:$0 sm:$0xff] }
  0x2a   : > { %392 = vmatpush.msra.mxu0 %v365_v5  ;;  %v448_v32 = vld [vmem:[%s1398_s2 + $0x18] sm:$0xff]  ;;  %v447_v34 = vld [vmem:[%s1398_s2 + $0x10] sm:$0xff]  ;;  %v446_v35 = vld [vmem:[%s1398_s2 + $0x8] sm:$0xff] }
  0x2b   : > { %881 = vmatmul.msk.f32.vlgmr.msra.gmra.mxu0 %vm373_vm1, %v364_v6  ;;  %467 = vmatpush.msra.mxu1 %v448_v32  ;;  %v445_v38 = vld [vmem:[%s1398_s2] sm:$0xff] }
  0x2c   : > { %505 = vmatpush.msra.mxu2 %v884_v36 }
  0x2d   : > { %468 = vmatpush.msra.mxu1 %v447_v34  ;;  %889 = vmatmul.msk.f32.vlgmr.msra.gmra.mxu2 %vm373_vm1, %v476_v37 }
  0x2f   : > { %469 = vmatpush.msra.mxu1 %v446_v35 }
  0x31   : > { %470 = vmatpush.msra.mxu1 %v445_v38 }
  0xa8   : > { %v394_v8 = vpop.f32.mrf.mxu0 }
  0xa9   : > { %v395_v9 = vadd.f32 %v961_v7, %v394_v8  ;;  %v562_v7 = vld [vmem:[%s1381_s6 + $0x18] sm:$0xff]  ;;  %v561_v8 = vld [vmem:[%s1381_s6 + $0x10] sm:$0xff] }
  0xaa   : > { %577 = vmatpush.msra.mxu3 %v562_v7 }
  0xab   : > { %418 = vrot.lane.b32.xlu0 %v395_v9, %s1387_s27  ;;  %v397_v11 = vadd.f32 %v395_v9, %v363_v10  ;;  %v560_v9 = vld [vmem:[%s1381_s6 + $0x8] sm:$0xff] }
  0xac   : > { %578 = vmatpush.msra.mxu3 %v561_v8 }
  0xad   : > { %v882_v12 = vmul.f32 -1.442695, %v397_v11 }
  0xae   : > { %579 = vmatpush.msra.mxu3 %v560_v9 }
  0xaf   : > { %964 = vpow2.f32 %v882_v12 }
  0xb0   : > { %v507_v47 = vpop.f32.mrf.mxu2 }
  0xb1   : > { %v508_v48 = vadd.f32 %v962_v46, %v507_v47  ;;  %v709_v47 = vld [vmem:[%s1382_s7 + $0x10] sm:$0xff] }
  0xb5   : > { %v965_v13 = vpop.eup %964 }
  0xb6   : > { %v401_v14 = vadd.f32 1.0, %v965_v13 }
  0xb8   : > { %966 = vrcp.f32 %v401_v14  ;;  %v413_v20 = vand.u32 2147483648, %v401_v14  ;;  %vm407_vm3 = vweird.f32 %v401_v14  ;;  %v411_v21 = vand.u32 2147483647, %v401_v14 }
  0xba   : > { %v414_v23 = vor.u32 1.1754944e-38, %v413_v20  ;;  %vm412_vm5 = vcmp.eq.f32.partialorder %v411_v21, 8.507059e+37  ;;  %v901_v20 = vld [vmem:[%s1382_s7 + $0x38] sm:$0xff]  ;;  %v900_v21 = vld [vmem:[%s1382_s7 + $0x30] sm:$0xff] }
  0xbe   : > { %v967_v15 = vpop.eup %966 }
  0xbf   : > { %v403_v16 = vmul.f32 %v967_v15, %v401_v14  ;;  %vm408_vm2 = vweird.f32 %v967_v15 }
  0xc0   : > { %vm409_vm4 = vmor %vm407_vm3, %vm408_vm2 }
  0xc1   : > { %v404_v17 = vsub.f32 1.0, %v403_v16 }
  0xc3   : > { %v405_v18 = vmul.f32 %v967_v15, %v404_v17  ;;  %v558_v17 = vld [vmem:[%s1383_s8 + $0x8] sm:$0xff] }
  0xc4   : > { %894 = vmatpush.xpose.msk.msrb.mxu1 %vm373_vm1, %v558_v17 }
  0xc5   : > { %v406_v19 = vadd.f32 %v967_v15, %v405_v18  ;;  %v557_v18 = vld [vmem:[%s1383_s8] sm:$0xff] }
  0xc6   : > { %892 = vmatpush.xpose.msk.msrb.mxu0 %vm373_vm1, %v557_v18  ;;  %679 = vmatpush.msrb.mxu2 %v557_v18 }
  0xc7   : > { %v410_v22 = vsel %vm409_vm4, %v967_v15, %v406_v19 }
  0xc8   : > { %v415_v25 = vsel %vm412_vm5, %v414_v23, %v410_v22  ;;  %v899_v22 = vld [vmem:[%s1382_s7 + $0x28] sm:$0xff]  ;;  %v898_v23 = vld [vmem:[%s1382_s7 + $0x20] sm:$0xff] }
  0xc9   : > { %v428_v40 = vsub.f32 1.0, %v415_v25 }
  0xca   : > { %728 = vmatpush.msra.mxu0 %v901_v20 }
  0xcc   : > { %729 = vmatpush.msra.mxu0 %v900_v21 }
  0xce   : > { %730 = vmatpush.msra.mxu0 %v899_v22 }
  0xd0   : > { %731 = vmatpush.msra.mxu0 %v898_v23 }
 0x11d   : > { %v419_v24 = vpop.permute.xlu0 %418 }
 0x11e   : > { %v421_v26 = vmul.f32 %v419_v24, %v415_v25 }
 0x120   : > { %423 = vrot.lane.b32.xlu0 %v421_v26, %s1387_s27 }
 0x192   : > { %v424_v27 = vpop.permute.xlu0 %423 }
 0x193   : > { %v426_v28 = vadd.f32 %v424_v27, %v363_v10  ;;  %v559_v10 = vld [vmem:[%s1381_s6] sm:$0xff] }
 0x194   : > { %580 = vmatpush.msra.mxu3 %v559_v10 }
 0x195   : > { %968 = vtanh.f32 %v426_v28 }
 0x196   : > { %702 = vmatpush.msrb.mxu3 %v558_v17 }
 0x19b   : > { %v969_v29 = vpop.eup %968 }
 0x19c   : > { %430 = vrot.lane.b32.xlu1 %v969_v29, %s1083_s11 }
 0x1a4   : > { %434 = vrot.lane.b32.xlu1 %v364_v6, %s1389_s28 }
 0x20e   : > { %v431_v39 = vpop.permute.xlu1 %430 }
 0x20f   : > { %v433_v42 = vmul.f32 %v431_v39, %v428_v40  ;;  %v710_v40 = vld [vmem:[%s1382_s7 + $0x18] sm:$0xff] }
 0x216   : > { %v435_v41 = vpop.permute.xlu1 %434 }
 0x217   : > { %v437_v43 = vmul.f32 %v435_v41, %v415_v25 }
 0x219   : > { %v438_v44 = vadd.f32 %v437_v43, %v433_v42 }
 0x21b   : > { %440 = vrot.lane.b32.xlu2 %v438_v44, %s1083_s11 }
 0x223   : > { %531 = vrot.lane.b32.xlu2 %v508_v48, %s1399_s25 }
 0x22b   : > { %547 = vrot.lane.b32.xlu2 %v476_v37, %s1400_s21 }
 0x275   : > { %v441_v45 = vpop.permute.xlu2 %440 }
 0x276   : > { %444 = vst.msk [vmem:[#allocation2] sm:$0x3] %vm443_vm6, %v441_v45  ;;  %883 = vmatmul.msk.f32.vlgmr.msra.gmra.mxu1 %vm373_vm1, %v441_v45 }
 0x277   : > { %755 = vmatpush.msra.mxu1 %v710_v40 }
 0x279   : > { %756 = vmatpush.msra.mxu1 %v709_v47 }
 0x27d   : > { %v532_v2 = vpop.permute.xlu2 %531 }
 0x285   : > { %v548_v11 = vpop.permute.xlu2 %547 }
 0x2f3   : > { %v472_v50 = vpop.f32.mrf.mxu1 }
 0x2f4   : > { %v473_v51 = vadd.f32 %v963_v49, %v472_v50  ;;  %v707_v49 = vld [vmem:[%s1382_s7] sm:$0xff] }
 0x2f6   : > { %v510_v52 = vadd.f32 %v508_v48, %v473_v51  ;;  %v708_v48 = vld [vmem:[%s1382_s7 + $0x8] sm:$0xff] }
 0x2f7   : > { %757 = vmatpush.msra.mxu1 %v708_v48 }
 0x2f8   : > { %v890_v53 = vmul.f32 -1.442695, %v510_v52 }
 0x2f9   : > { %758 = vmatpush.msra.mxu1 %v707_v49 }
 0x2fa   : > { %970 = vpow2.f32 %v890_v53 }
 0x300   : > { %v971_v54 = vpop.eup %970 }
 0x301   : > { %v514_v55 = vadd.f32 1.0, %v971_v54 }
 0x303   : > { %972 = vrcp.f32 %v514_v55  ;;  %v526_v59 = vand.u32 2147483648, %v514_v55  ;;  %v524_v61 = vand.u32 2147483647, %v514_v55  ;;  %vm520_vm8 = vweird.f32 %v514_v55 }
 0x305   : > { %v527_v63 = vor.u32 1.1754944e-38, %v526_v59  ;;  %vm525_vm10 = vcmp.eq.f32.partialorder %v524_v61, 8.507059e+37 }
 0x309   : > { %v973_v56 = vpop.eup %972 }
 0x30a   : > { %v516_v57 = vmul.f32 %v973_v56, %v514_v55  ;;  %vm521_vm7 = vweird.f32 %v973_v56 }
 0x30b   : > { %vm522_vm9 = vmor %vm520_vm8, %vm521_vm7 }
 0x30c   : > { %v517_v58 = vsub.f32 1.0, %v516_v57 }
 0x30e   : > { %v518_v60 = vmul.f32 %v973_v56, %v517_v58 }
 0x310   : > { %v519_v62 = vadd.f32 %v973_v56, %v518_v60 }
 0x312   : > { %v523_v0 = vsel %vm522_vm9, %v973_v56, %v519_v62 }
 0x313   : > { %v528_v1 = vsel %vm525_vm10, %v527_v63, %v523_v0 }
 0x314   : > { %v534_v3 = vmul.f32 %v532_v2, %v528_v1  ;;  %v541_v12 = vsub.f32 1.0, %v528_v1  ;;  %v550_v14 = vmul.f32 %v548_v11, %v528_v1 }
 0x316   : > { %536 = vrot.lane.b32.xlu0 %v534_v3, %s1399_s25  ;;  %s1401_s25 = scalar_lea.vmem [#allocation3], %s1196_s26 }
 0x388   : > { %v537_v4 = vpop.permute.xlu0 %536 }
 0x389   : > { %v539_v5 = vadd.f32 %v537_v4, %v473_v51 }
 0x38b   : > { %974 = vtanh.f32 %v539_v5 }
 0x391   : > { %v975_v6 = vpop.eup %974 }
 0x392   : > { %543 = vrot.lane.b32.xlu1 %v975_v6, %s1083_s11 }
 0x404   : > { %v544_v13 = vpop.permute.xlu1 %543 }
 0x405   : > { %v546_v15 = vmul.f32 %v544_v13, %v541_v12 }
 0x407   : > { %v551_v16 = vadd.f32 %v550_v14, %v546_v15 }
 0x409   : > { %553 = vrot.lane.b32.xlu0 %v551_v16, %s1083_s11 }
 0x47b   : > { %v554_v19 = vpop.permute.xlu0 %553 }
 0x47c   : > { %556 = vst.msk [vmem:[#allocation2 + $0x2] sm:$0x3] %vm443_vm6, %v554_v19  ;;  %891 = vmatmul.msk.f32.vlgmr.msra.gmra.mxu3 %vm373_vm1, %v554_v19 }
 0x4ff   : > { %v582_v24 = vpop.f32.mrf.mxu3 }
 0x500   : > { %v586_v25 = vrot.slane %v582_v24, 1  ;;  %893 = vmatmul.msk.f32.vlgmr.msrb.gmra.mxu0 %vm373_vm1, %v582_v24 }
 0x502   : > { %895 = vmatmul.msk.f32.vlgmr.msrb.gmra.mxu1 %vm373_vm1, %v586_v25 }
 0x508   : > { %902 = vmatmul.msk.f32.vlgmr.msra.gmra.mxu0 %vm373_vm1, %v554_v19 }
 0x57d   : > { %v609_v26 = vpop.f32.mrf.mxu0 }
 0x57e   : > { %v638_v27 = vsel %vm637_vm11, %v609_v26, -inf }
 0x57f   : > { %639 = vmax.xlane.f32.xlu2 %v638_v27  ;;  %v634_v28 = vpop.f32.mrf.mxu1 }
 0x580   : > { %v641_v29 = vsel %vm637_vm11, %v634_v28, -inf }
 0x581   : > { %642 = vmax.xlane.f32.xlu1 %v641_v29 }
 0x585   : > { %v733_v54 = vpop.f32.mrf.mxu0 }
 0x5f2   : > { %v640_v30 = vpop.xlane.xlu2 %639 }
 0x5f3   : > { %v644_v31 = vsub.f32 %v609_v26, %v640_v30 }
 0x5f4   : > { %v643_v32 = vpop.xlane.xlu1 %642 }
 0x5f5   : > { %v646_v33 = vmul.f32 1.442695, %v644_v31  ;;  %v645_v34 = vsub.f32 %v634_v28, %v643_v32 }
 0x5f7   : > { %976 = vpow2.f32 %v646_v33  ;;  %v648_v35 = vmul.f32 1.442695, %v645_v34 }
 0x5f9   : > { %978 = vpow2.f32 %v648_v35 }
 0x5fd   : > { %v977_v36 = vpop.eup %976 }
 0x5fe   : > { %v650_v37 = vsel %vm637_vm11, %v977_v36, 0.0 }
 0x5ff   : > { %v979_v38 = vpop.eup %978  ;;  %651 = vadd.xlane.f32.xlu2 %v650_v37 }
 0x600   : > { %v653_v39 = vsel %vm637_vm11, %v979_v38, 0.0 }
 0x601   : > { %654 = vadd.xlane.f32.xlu0 %v653_v39 }
 0x672   : > { %v652_v41 = vpop.xlane.xlu2 %651 }
 0x673   : > { %980 = vrcp.f32 %v652_v41 }
 0x674   : > { %v655_v42 = vpop.xlane.xlu0 %654 }
 0x675   : > { %982 = vrcp.f32 %v655_v42 }
 0x679   : > { %v981_v43 = vpop.eup %980 }
 0x67a   : > { %v658_v44 = vmul.f32 %v981_v43, %v977_v36 }
 0x67b   : > { %v983_v45 = vpop.eup %982 }
 0x67c   : > { %v659_v46 = vmul.f32 %v983_v45, %v979_v38  ;;  %896 = vmatmul.msk.f32.vlgmr.msrb.gmra.mxu2 %vm660_vm12, %v658_v44 }
 0x67e   : > { %897 = vmatmul.msk.f32.vlgmr.msrb.gmra.mxu3 %vm660_vm12, %v659_v46 }
 0x6ff   : > { %v681_v52 = vpop.f32.mrf.mxu2 }
 0x701   : > { %v704_v50 = vpop.f32.mrf.mxu3 }
 0x702   : > { %v738_v51 = vrot.slane %v704_v50, 7 }
 0x704   : > { %v740_v53 = vsel %vm739_vm13, %v738_v51, %v681_v52 }
 0x705   : > { %903 = vmatmul.msk.f32.vlgmr.msra.gmra.mxu1 %vm373_vm1, %v740_v53 }
 0x782   : > { %v760_v55 = vpop.f32.mrf.mxu1 }
 0x783   : > { %v761_v56 = vadd.f32 %v760_v55, %v733_v54 }
 0x785   : > { %984 = vtanh.f32 %v761_v56 }
 0x788   : > { %768 = sbr.rel (%p904_p12) target bundleno = 1936 (0x790), region = 64 }
 0x78b   : > { %v985_v57 = vpop.eup %984 }
 0x78c   : > { %764 = vst.msk [vmem:[%s1401_s25] sm:$0x3] %vm443_vm6, %v985_v57 }
 0x78d   : > { %v769_v58 = vld [vmem:[#allocation2] sm:$0x3]  ;;  %v770_v59 = vld [vmem:[#allocation2 + $0x2] sm:$0x3] }
 0x78e   : > { %771 = vst.msk [vmem:[#allocation5] sm:$0x3] %vm443_vm6, %v769_v58 }
 0x78f   : > { %772 = vst.msk [vmem:[#allocation5 + $0x2] sm:$0x3] %vm443_vm6, %v770_v59 }
 0x790 PF: > { %s906_s21 = sshll.u32 %s1163_s17, 1  ;;  %s1402_s20 = scalar_lea.vmem [#allocation3], %s1196_s26 }
 0x791   : > { %s784_s18 = scalar_lea.hbm %s1384_s9, %s906_s21  ;;  %s786_s11 = sshll.u32 %s1402_s20, 4  ;;  %s787_s11 = int_to_ptr.vmem [resolvable:$true] %s786_s11 }
 0x792   : > { %s788_s22 = sshll.u32 %s784_s18, 4  ;;  %s1403_s12 = sand.u32 1, %s1072_s14   ;;  %s789_s22 = int_to_ptr.hbm [resolvable:$true] %s788_s22 }
 0x793   : > { %s774_s27 = scalar_lea.sflag [#allocation4], %s1403_s12  ;;  %s1000_s28 = sshra.s32 %s789_s22, 4  ;;  %s1001_s28 = int_to_ptr.hbm [resolvable:$true] %s1000_s28 }
 0x794   : > { %s1002_s25 = scalar_lea.hbm %s1001_s28, 2  ;;  %s1006_s2 = scalar_lea.hbm %s1384_s9, 10 }
 0x795   : > { %p1003_p13 = scmp.ne.s32.totalorder %s1001_s28, %s1002_s25  ;;  %p1007_p3 = scmp.lt.s32.totalorder %s1001_s28, %s1384_s9 }
 0x796   : > { %p1008_p4 = scmp.lt.s32.totalorder %s1006_s2, %s1002_s25 }
 0x797   : > { %p1004_p0 = pnand %p1003_p13, %p1182_p5 }
 0x798   : > { %p1009_p7 = por %p1008_p4, %p1007_p3 }
 0x799   : > { %p1005_p1 = pneg %p1004_p0 }
 0x79b   : > { %p1010_p8 = pnand %p1009_p7, %p1005_p1 }
 0x79d   : > { %1013 = shalt.err (!%p1010_p8)
}
 0x79e   : > { %911 = dma.vmem_to_hbm [thread:$0]  (%p1182_p5), %s787_s11, 32, %s789_s22, %s774_s27  }
 0x79f   : > { %s1085_s26 = smov [#allocation5]   ;;  %s799_s0 = sshll.u32 %s1385_s10, 4  ;;  %s800_s0 = int_to_ptr.hbm [resolvable:$true] %s799_s0 }
 0x7a0   : > { %s797_s30 = sshll.u32 %s1085_s26, 4  ;;  %s1086_s1 = smov 2   ;;  %s798_s30 = int_to_ptr.vmem [resolvable:$true] %s797_s30 }
 0x7a1   : > { %s1404_s12 = smov 32  }
 0x7a2   : > { %913 = dma.vmem_to_hbm [thread:$0]  (%p237_p2), %s798_s30, 64, %s800_s0, [#allocation6], %s1404_s12, %s1404_s12, %s1086_s1  }
 0x7a3   : > { %1059 = dma.done.wait (%p237_p2), [#allocation6], 64  }
 0x7a4   : > { %1061 = vsyncadd (%p237_p2), [#allocation6], 4294967232 }
 0x7a5 PF: > { %p923_p5 = scmp.ge.s32.totalorder %s1080_s16, 2  ;;  %s819_s2 = sand.u32 1, %s1068_s13  }
 0x7a6   : > { %s820_s23 = scalar_lea.sflag [#allocation4], %s819_s2 }
 0x7a7   : > { %p918_p9 = pnand %p923_p5, %p1186_p6 }
 0x7a9   : > { %p919_p10 = pneg %p918_p9 }
 0x7ab   : > { %1063 = dma.done.wait (%p919_p10), %s820_s23, 32  }
 0x7ac   : > { %1065 = vsyncadd (%p919_p10), %s820_s23, 4294967264  ;;  %s1405_s11 = sld [smem:[#allocation9_spill]]  ;;  %p22_p11 = scmp.ge.s32.totalorder %s1167_s19, 7  }
 0x7ad   : > { %s1406_s13 = smov %s1072_s14  ;;  %s1407_s14 = smov %s1076_s15 }
 0x7ae   : > { %s1409_s16 = smov %s1167_s19  ;;  %24 = sbr.rel (!%p22_p11) target bundleno = 8 (0x8), region = 111 }
 0x7b2   : > { %s1408_s15 = smov %s1405_s11 }
 0x7b3   :  { %826 = vsyncpa [#allocation4], 1 }
 0x7b4   :  { %828 = vsyncpa [#allocation4 + $0x1], 1 }
 0x7b5   :  { %829 = vsyncpa [#allocation6], 1 }

</bundles_post_ra>
